<compile_context>
chip_gen: v6e
topology: v6e:2x2x1
jax: 0.10.0
libtpu: 0.0.40
codegen_flags: <defaults>
</compile_context>

<pallas_src>
import functools
import math

import numpy as np
import jax
import jax.numpy as jnp
from jax import lax
from jax.experimental import pallas as pl
from jax.experimental.pallas import tpu as pltpu

SH_C0 = 0.28209479177387814
_LANES = 128
GBLK = 1024  # gaussians per preprocess grid step = 8 sublanes x 128 lanes


def _preprocess_kernel(cam_ref, gin_ref, gout_ref):
    """Per-gaussian preprocessing on a sublane-filled (8,128) gaussian block.

    gin_ref : (14, 8, 128)  [x,y,z, s0,s1,s2, qr,qx,qy,qz, opa_logit, shr,shg,shb]
    gout_ref: (10, 8, 128)  [mx,my, A,B,C (power-folded conic), r,g,b, opa, depth]
    """
    # camera scalars from SMEM
    V = [[cam_ref[4 * i + j] for j in range(4)] for i in range(4)]        # world->view (row-vec)
    P = [[cam_ref[16 + 4 * i + j] for j in range(4)] for i in range(4)]   # full proj  (row-vec)
    fx = cam_ref[35]; fy = cam_ref[36]
    tanx = cam_ref[37]; tany = cam_ref[38]
    w_img = cam_ref[39]; h_img = cam_ref[40]
    n_valid = cam_ref[41]

    x = gin_ref[0]; y = gin_ref[1]; z = gin_ref[2]          # (8,128) each

    # view-space position (row-vector convention p_view = [p,1] @ V)
    tx = x * V[0][0] + y * V[1][0] + z * V[2][0] + V[3][0]
    ty = x * V[0][1] + y * V[1][1] + z * V[2][1] + V[3][1]
    tz = x * V[0][2] + y * V[1][2] + z * V[2][2] + V[3][2]

    # clip space via full projection, then NDC -> pixel coords (ndc2Pix)
    hx = x * P[0][0] + y * P[1][0] + z * P[2][0] + P[3][0]
    hy = x * P[0][1] + y * P[1][1] + z * P[2][1] + P[3][1]
    hw = x * P[0][3] + y * P[1][3] + z * P[2][3] + P[3][3]
    inv_w = pl.reciprocal(hw + 1e-7, approx=True)
    mx = ((hx * inv_w + 1.0) * w_img - 1.0) * 0.5
    my = ((hy * inv_w + 1.0) * h_img - 1.0) * 0.5

    # activations: scaling = exp, rotation = normalize, opacity = sigmoid
    s0 = jnp.exp(gin_ref[3]); s1 = jnp.exp(gin_ref[4]); s2 = jnp.exp(gin_ref[5])
    qr = gin_ref[6]; qx = gin_ref[7]; qy = gin_ref[8]; qz = gin_ref[9]
    qinv = lax.rsqrt(qr * qr + qx * qx + qy * qy + qz * qz)
    qr = qr * qinv; qx = qx * qinv; qy = qy * qinv; qz = qz * qinv

    R00 = 1.0 - 2.0 * (qy * qy + qz * qz); R01 = 2.0 * (qx * qy - qr * qz); R02 = 2.0 * (qx * qz + qr * qy)
    R10 = 2.0 * (qx * qy + qr * qz); R11 = 1.0 - 2.0 * (qx * qx + qz * qz); R12 = 2.0 * (qy * qz - qr * qx)
    R20 = 2.0 * (qx * qz - qr * qy); R21 = 2.0 * (qy * qz + qr * qx); R22 = 1.0 - 2.0 * (qx * qx + qy * qy)

    # Sigma = R diag(s^2) R^T  (get_covariance)
    s0q = s0 * s0; s1q = s1 * s1; s2q = s2 * s2
    c00 = R00 * R00 * s0q + R01 * R01 * s1q + R02 * R02 * s2q
    c01 = R00 * R10 * s0q + R01 * R11 * s1q + R02 * R12 * s2q
    c02 = R00 * R20 * s0q + R01 * R21 * s1q + R02 * R22 * s2q
    c11 = R10 * R10 * s0q + R11 * R11 * s1q + R12 * R12 * s2q
    c12 = R10 * R20 * s0q + R11 * R21 * s1q + R12 * R22 * s2q
    c22 = R20 * R20 * s0q + R21 * R21 * s1q + R22 * R22 * s2q

    # EWA splatting: cov2D = J W Sigma W^T J^T + 0.3 * I
    limx = 1.3 * tanx; limy = 1.3 * tany
    inv_tz = pl.reciprocal(tz, approx=True)
    txc = jnp.clip(tx * inv_tz, -limx, limx) * tz
    tyc = jnp.clip(ty * inv_tz, -limy, limy) * tz
    inv_tz2 = inv_tz * inv_tz
    zeros = jnp.zeros_like(tz)
    J = [[fx * inv_tz, zeros, -fx * txc * inv_tz2],
         [zeros, fy * inv_tz, -fy * tyc * inv_tz2]]
    W3 = [[V[jc][ic] for jc in range(3)] for ic in range(3)]   # W3[i][j] = V[j][i]
    T = [[J[r][0] * W3[0][c] + J[r][1] * W3[1][c] + J[r][2] * W3[2][c] for c in range(3)]
         for r in range(2)]
    Sig = [[c00, c01, c02], [c01, c11, c12], [c02, c12, c22]]
    M = [[T[r][0] * Sig[0][c] + T[r][1] * Sig[1][c] + T[r][2] * Sig[2][c] for c in range(3)]
         for r in range(2)]
    cov_a = M[0][0] * T[0][0] + M[0][1] * T[0][1] + M[0][2] * T[0][2] + 0.3
    cov_b = M[0][0] * T[1][0] + M[0][1] * T[1][1] + M[0][2] * T[1][2]
    cov_c = M[1][0] * T[1][0] + M[1][1] * T[1][1] + M[1][2] * T[1][2] + 0.3
    det = cov_a * cov_c - cov_b * cov_b

    # validity: in front of camera, invertible 2D cov, and not a padded gaussian
    gid = (pl.program_id(0) * GBLK
           + lax.broadcasted_iota(jnp.int32, tz.shape, 0) * _LANES
           + lax.broadcasted_iota(jnp.int32, tz.shape, 1)).astype(jnp.float32)
    valid = (tz > 0.2) & (det > 0.0) & (gid < n_valid)

    inv_det = pl.reciprocal(jnp.where(det > 0.0, det, 1.0), approx=True)
    # conic = [cov_c, -cov_b, cov_a] / det ; fold the -0.5 of the power term here:
    #   power = A*dx^2 + B*dx*dy + C*dy^2 with A=-0.5*conic_a, B=-conic_b, C=-0.5*conic_c
    A = jnp.where(valid, -0.5 * (cov_c * inv_det), 0.0)
    B = jnp.where(valid, cov_b * inv_det, 0.0)
    C = jnp.where(valid, -0.5 * (cov_a * inv_det), 0.0)

    # eval_sh degree 0 + clamp_min(.. + 0.5, 0)
    col_r = jnp.maximum(SH_C0 * gin_ref[11] + 0.5, 0.0)
    col_g = jnp.maximum(SH_C0 * gin_ref[12] + 0.5, 0.0)
    col_b = jnp.maximum(SH_C0 * gin_ref[13] + 0.5, 0.0)

    opa = 1.0 / (1.0 + jnp.exp(-gin_ref[10]))

    gout_ref[0] = jnp.where(valid, mx, 0.0)
    gout_ref[1] = jnp.where(valid, my, 0.0)
    gout_ref[2] = A
    gout_ref[3] = B
    gout_ref[4] = C
    gout_ref[5] = col_r
    gout_ref[6] = col_g
    gout_ref[7] = col_b
    gout_ref[8] = jnp.where(valid, opa, 0.0)
    gout_ref[9] = jnp.where(valid, tz, 1e10)          # culled gaussians sort to the back


def _rasterize_kernel(attr_ref, bg_ref, img_ref, *, img_w, tile_rows, n_gauss, unroll):
    """Front-to-back alpha compositing on a lane-dense pixel tile.

    attr_ref: SMEM (9, n_gauss) [mx,my, A,B,C, r,g,b, opa] (depth-sorted)
    bg_ref  : SMEM (3,)
    img_ref : VMEM (3, tile_rows, 128) block of the flattened (3, H*W/128, 128) image
    """
    tile_pix = tile_rows * _LANES
    base = pl.program_id(0) * tile_pix
    lin = (base
           + lax.broadcasted_iota(jnp.int32, (tile_rows, _LANES), 0) * _LANES
           + lax.broadcasted_iota(jnp.int32, (tile_rows, _LANES), 1))
    py_i = lin // img_w
    px = (lin - py_i * img_w).astype(jnp.float32)
    py = py_i.astype(jnp.float32)

    def body(i, carry):
        cr, cg, cb, T, alive = carry
        mx = attr_ref[0, i]; my = attr_ref[1, i]
        A = attr_ref[2, i]; B = attr_ref[3, i]; C = attr_ref[4, i]
        kr = attr_ref[5, i]; kg = attr_ref[6, i]; kb = attr_ref[7, i]
        op = attr_ref[8, i]
        dx = px - mx
        dy = py - my
        power = (A * dx + B * dy) * dx + (C * dy) * dy
        alpha = jnp.minimum(0.99, op * jnp.exp(power))
        test_T = T * (1.0 - alpha)
        ok = (alive > 0.0) & (power <= 0.0) & (alpha >= (1.0 / 255.0))
        big = test_T >= 1e-4
        add = ok & big
        w = jnp.where(add, alpha * T, 0.0)
        cr = cr + kr * w
        cg = cg + kg * w
        cb = cb + kb * w
        T = jnp.where(add, test_T, T)
        # CUDA semantics: once a non-skipped gaussian would push T below 1e-4,
        # stop compositing for this pixel (that gaussian is NOT applied).
        alive = jnp.where(ok & jnp.logical_not(big), 0.0, alive)
        return cr, cg, cb, T, alive

    zero = jnp.zeros((tile_rows, _LANES), jnp.float32)
    one = jnp.ones((tile_rows, _LANES), jnp.float32)
    cr, cg, cb, T, _ = lax.fori_loop(0, n_gauss, body,
                                     (zero, zero, zero, one, one),
                                     unroll=unroll)

    # composite over background (bg_color from Model.forward)
    img_ref[0] = cr + T * bg_ref[0]
    img_ref[1] = cg + T * bg_ref[1]
    img_ref[2] = cb + T * bg_ref[2]


def render_gaussians(xyz, scales_log, quats, opacity_logit, sh_dc, cam, bg,
                     img_h, img_w, *, tile_rows=8, unroll=4):
    """preprocess kernel -> depth sort (glue) -> tiled rasterize kernel."""
    f32 = jnp.float32
    N = xyz.shape[0]
    N_pad = ((N + GBLK - 1) // GBLK) * GBLK

    def pad_rows(a, width):
        a = jnp.asarray(a, f32).reshape(N, width)
        return jnp.pad(a, ((0, N_pad - N), (0, 0)))

    # pack all per-gaussian input channels into one (14, N_pad/128, 128) array
    gin = jnp.concatenate([pad_rows(xyz, 3), pad_rows(scales_log, 3),
                           pad_rows(quats, 4), pad_rows(opacity_logit, 1),
                           pad_rows(sh_dc, 3)], axis=1)          # (N_pad, 14)
    gin = gin.T.reshape(14, N_pad // _LANES, _LANES)

    cam = jnp.asarray(cam, f32).at[41].set(np.float32(N))        # n_valid scalar

    smem = pl.BlockSpec(memory_space=pltpu.MemorySpace.SMEM)

    n_gblk = N_pad // GBLK
    gout = pl.pallas_call(
        _preprocess_kernel,
        out_shape=jax.ShapeDtypeStruct((10, N_pad // _LANES, _LANES), f32),
        grid=(n_gblk,),
        in_specs=[smem,
                  pl.BlockSpec((14, GBLK // _LANES, _LANES), lambda g: (0, g, 0))],
        out_specs=pl.BlockSpec((10, GBLK // _LANES, _LANES), lambda g: (0, g, 0)),
        compiler_params=pltpu.CompilerParams(dimension_semantics=("parallel",)),
    )(cam, gin)

    gout = gout.reshape(10, N_pad)
    depth = gout[9]
    order = jnp.argsort(depth)            # global front-to-back sort (replaces CUDA tile sort)
    attrs = gout[:9][:, order]            # single packed gather of all render attributes

    # lane-dense flattened image: (3, H*W/128, 128), reshaped to (3,H,W) afterwards
    n_pix = img_h * img_w
    assert n_pix % _LANES == 0, "image size must be a multiple of 128 pixels"
    rows = n_pix // _LANES
    if rows % tile_rows != 0:
        tile_rows = rows
    grid_t = rows // tile_rows

    kern = functools.partial(_rasterize_kernel, img_w=img_w, tile_rows=tile_rows,
                             n_gauss=N_pad, unroll=unroll)
    img = pl.pallas_call(
        kern,
        out_shape=jax.ShapeDtypeStruct((3, rows, _LANES), f32),
        grid=(grid_t,),
        in_specs=[smem, smem],
        out_specs=pl.BlockSpec((3, tile_rows, _LANES), lambda t: (0, t, 0)),
        compiler_params=pltpu.CompilerParams(dimension_semantics=("parallel",)),
    )(attrs, jnp.asarray(bg, f32))
    return img.reshape(3, img_h, img_w)


if __name__ == "__main__":
    key = jax.random.PRNGKey(0)
    N = 128
    img_h = img_w = 64
    k1, k2, k3, k4 = jax.random.split(key, 4)

    # GaussianModel.create_from_pcd semantics (synthetic, deterministic)
    xyz = jax.random.uniform(k1, (N, 3), minval=-1.3, maxval=1.3)            # point positions
    colors = jax.random.uniform(k2, (N, 3))                                  # point colors
    sh_dc = (colors - 0.5) / SH_C0                                           # RGB2SH -> features_dc
    scales_log = jnp.log(jax.random.uniform(k3, (N, 3), minval=0.05, maxval=0.2))  # _scaling (log)
    quats = jax.random.normal(k4, (N, 4))                                    # _rotation (pre-norm)
    opacity_logit = jnp.full((N, 1), math.log(0.1 / 0.9), jnp.float32)       # inverse_sigmoid(0.1)

    # viewpoint camera (deterministic), row-vector convention
    fovx = fovy = math.radians(60.0)
    tanx = math.tan(0.5 * fovx)
    tany = math.tan(0.5 * fovy)
    fx = img_w / (2.0 * tanx)
    fy = img_h / (2.0 * tany)
    znear, zfar = 0.01, 100.0
    V = np.eye(4, dtype=np.float32)
    V[3, 2] = 4.0                                     # camera at (0,0,-4) looking along +z
    P_col = np.zeros((4, 4), dtype=np.float32)
    P_col[0, 0] = 1.0 / tanx
    P_col[1, 1] = 1.0 / tany
    P_col[2, 2] = zfar / (zfar - znear)
    P_col[2, 3] = -(zfar * znear) / (zfar - znear)
    P_col[3, 2] = 1.0
    full_proj = V @ P_col.T                           # full_proj_transform (row-vector form)

    cam = np.zeros((48,), dtype=np.float32)
    cam[0:16] = V.reshape(-1)
    cam[16:32] = full_proj.reshape(-1)
    cam[32:35] = np.array([0.0, 0.0, -4.0], dtype=np.float32)   # camera_center
    cam[35] = fx; cam[36] = fy; cam[37] = tanx; cam[38] = tany
    cam[39] = float(img_w); cam[40] = float(img_h)
    # cam[41] (n_valid) is filled in by the wrapper

    bg = jnp.zeros((3,), jnp.float32)                 # white_bkgd=False -> [0,0,0]

    img = render_gaussians(xyz, scales_log, quats, opacity_logit, sh_dc,
                           jnp.asarray(cam), bg, img_h, img_w)
    img = jax.block_until_ready(img)
    assert img.shape == (3, img_h, img_w)
    assert bool(jnp.all(jnp.isfinite(img)))
    print("KERNEL_OK")
</pallas_src>

<mosaic_0001>
module attributes {stable_mosaic.version = 11 : i64} {
  func.func @_preprocess_kernel(%arg0: i32, %arg1: memref<48xf32, #tpu.memory_space<smem>>, %arg2: memref<14x8x128xf32, #tpu.memory_space<vmem>>, %arg3: memref<10x8x128xf32, #tpu.memory_space<vmem>>) attributes {dimension_semantics = [#tpu.dimension_semantics<parallel>], iteration_bounds = array<i64: 1>, scalar_prefetch = 0 : i64, scratch_operands = 0 : i64, tpu.core_type = #tpu.core_type<tc>, window_params = [{transform_indices = @transform_0, window_bounds = array<i64: 48>}, {transform_indices = @transform_1, window_bounds = array<i64: 14, 8, 128>}, {transform_indices = @transform_2, window_bounds = array<i64: 10, 8, 128>}]} {
    %c0 = arith.constant 0 : index
    %0 = memref.load %arg1[%c0] : memref<48xf32, #tpu.memory_space<smem>>
    %c1 = arith.constant 1 : index
    %1 = memref.load %arg1[%c1] : memref<48xf32, #tpu.memory_space<smem>>
    %c2 = arith.constant 2 : index
    %2 = memref.load %arg1[%c2] : memref<48xf32, #tpu.memory_space<smem>>
    %c4 = arith.constant 4 : index
    %3 = memref.load %arg1[%c4] : memref<48xf32, #tpu.memory_space<smem>>
    %c5 = arith.constant 5 : index
    %4 = memref.load %arg1[%c5] : memref<48xf32, #tpu.memory_space<smem>>
    %c6 = arith.constant 6 : index
    %5 = memref.load %arg1[%c6] : memref<48xf32, #tpu.memory_space<smem>>
    %c8 = arith.constant 8 : index
    %6 = memref.load %arg1[%c8] : memref<48xf32, #tpu.memory_space<smem>>
    %c9 = arith.constant 9 : index
    %7 = memref.load %arg1[%c9] : memref<48xf32, #tpu.memory_space<smem>>
    %c10 = arith.constant 10 : index
    %8 = memref.load %arg1[%c10] : memref<48xf32, #tpu.memory_space<smem>>
    %c12 = arith.constant 12 : index
    %9 = memref.load %arg1[%c12] : memref<48xf32, #tpu.memory_space<smem>>
    %c13 = arith.constant 13 : index
    %10 = memref.load %arg1[%c13] : memref<48xf32, #tpu.memory_space<smem>>
    %c14 = arith.constant 14 : index
    %11 = memref.load %arg1[%c14] : memref<48xf32, #tpu.memory_space<smem>>
    %c16 = arith.constant 16 : index
    %12 = memref.load %arg1[%c16] : memref<48xf32, #tpu.memory_space<smem>>
    %c17 = arith.constant 17 : index
    %13 = memref.load %arg1[%c17] : memref<48xf32, #tpu.memory_space<smem>>
    %c19 = arith.constant 19 : index
    %14 = memref.load %arg1[%c19] : memref<48xf32, #tpu.memory_space<smem>>
    %c20 = arith.constant 20 : index
    %15 = memref.load %arg1[%c20] : memref<48xf32, #tpu.memory_space<smem>>
    %c21 = arith.constant 21 : index
    %16 = memref.load %arg1[%c21] : memref<48xf32, #tpu.memory_space<smem>>
    %c23 = arith.constant 23 : index
    %17 = memref.load %arg1[%c23] : memref<48xf32, #tpu.memory_space<smem>>
    %c24 = arith.constant 24 : index
    %18 = memref.load %arg1[%c24] : memref<48xf32, #tpu.memory_space<smem>>
    %c25 = arith.constant 25 : index
    %19 = memref.load %arg1[%c25] : memref<48xf32, #tpu.memory_space<smem>>
    %c27 = arith.constant 27 : index
    %20 = memref.load %arg1[%c27] : memref<48xf32, #tpu.memory_space<smem>>
    %c28 = arith.constant 28 : index
    %21 = memref.load %arg1[%c28] : memref<48xf32, #tpu.memory_space<smem>>
    %c29 = arith.constant 29 : index
    %22 = memref.load %arg1[%c29] : memref<48xf32, #tpu.memory_space<smem>>
    %c31 = arith.constant 31 : index
    %23 = memref.load %arg1[%c31] : memref<48xf32, #tpu.memory_space<smem>>
    %c35 = arith.constant 35 : index
    %24 = memref.load %arg1[%c35] : memref<48xf32, #tpu.memory_space<smem>>
    %c36 = arith.constant 36 : index
    %25 = memref.load %arg1[%c36] : memref<48xf32, #tpu.memory_space<smem>>
    %c37 = arith.constant 37 : index
    %26 = memref.load %arg1[%c37] : memref<48xf32, #tpu.memory_space<smem>>
    %c38 = arith.constant 38 : index
    %27 = memref.load %arg1[%c38] : memref<48xf32, #tpu.memory_space<smem>>
    %c39 = arith.constant 39 : index
    %28 = memref.load %arg1[%c39] : memref<48xf32, #tpu.memory_space<smem>>
    %c40 = arith.constant 40 : index
    %29 = memref.load %arg1[%c40] : memref<48xf32, #tpu.memory_space<smem>>
    %c41 = arith.constant 41 : index
    %30 = memref.load %arg1[%c41] : memref<48xf32, #tpu.memory_space<smem>>
    %c0_0 = arith.constant 0 : index
    %c0_1 = arith.constant 0 : index
    %c0_2 = arith.constant 0 : index
    %31 = vector.load %arg2[%c0_0, %c0_1, %c0_2] : memref<14x8x128xf32, #tpu.memory_space<vmem>>, vector<1x8x128xf32>
    %32 = vector.shape_cast %31 : vector<1x8x128xf32> to vector<8x128xf32>
    %c1_3 = arith.constant 1 : index
    %c0_4 = arith.constant 0 : index
    %c0_5 = arith.constant 0 : index
    %33 = vector.load %arg2[%c1_3, %c0_4, %c0_5] : memref<14x8x128xf32, #tpu.memory_space<vmem>>, vector<1x8x128xf32>
    %34 = vector.shape_cast %33 : vector<1x8x128xf32> to vector<8x128xf32>
    %c2_6 = arith.constant 2 : index
    %c0_7 = arith.constant 0 : index
    %c0_8 = arith.constant 0 : index
    %35 = vector.load %arg2[%c2_6, %c0_7, %c0_8] : memref<14x8x128xf32, #tpu.memory_space<vmem>>, vector<1x8x128xf32>
    %36 = vector.shape_cast %35 : vector<1x8x128xf32> to vector<8x128xf32>
    %37 = vector.broadcast %0 : f32 to vector<8x128xf32>
    %38 = arith.mulf %32, %37 : vector<8x128xf32>
    %39 = vector.broadcast %3 : f32 to vector<8x128xf32>
    %40 = arith.mulf %34, %39 : vector<8x128xf32>
    %41 = arith.addf %38, %40 : vector<8x128xf32>
    %42 = vector.broadcast %6 : f32 to vector<8x128xf32>
    %43 = arith.mulf %36, %42 : vector<8x128xf32>
    %44 = arith.addf %41, %43 : vector<8x128xf32>
    %45 = vector.broadcast %9 : f32 to vector<8x128xf32>
    %46 = arith.addf %44, %45 : vector<8x128xf32>
    %47 = vector.broadcast %1 : f32 to vector<8x128xf32>
    %48 = arith.mulf %32, %47 : vector<8x128xf32>
    %49 = vector.broadcast %4 : f32 to vector<8x128xf32>
    %50 = arith.mulf %34, %49 : vector<8x128xf32>
    %51 = arith.addf %48, %50 : vector<8x128xf32>
    %52 = vector.broadcast %7 : f32 to vector<8x128xf32>
    %53 = arith.mulf %36, %52 : vector<8x128xf32>
    %54 = arith.addf %51, %53 : vector<8x128xf32>
    %55 = vector.broadcast %10 : f32 to vector<8x128xf32>
    %56 = arith.addf %54, %55 : vector<8x128xf32>
    %57 = vector.broadcast %2 : f32 to vector<8x128xf32>
    %58 = arith.mulf %32, %57 : vector<8x128xf32>
    %59 = vector.broadcast %5 : f32 to vector<8x128xf32>
    %60 = arith.mulf %34, %59 : vector<8x128xf32>
    %61 = arith.addf %58, %60 : vector<8x128xf32>
    %62 = vector.broadcast %8 : f32 to vector<8x128xf32>
    %63 = arith.mulf %36, %62 : vector<8x128xf32>
    %64 = arith.addf %61, %63 : vector<8x128xf32>
    %65 = vector.broadcast %11 : f32 to vector<8x128xf32>
    %66 = arith.addf %64, %65 : vector<8x128xf32>
    %67 = vector.broadcast %12 : f32 to vector<8x128xf32>
    %68 = arith.mulf %32, %67 : vector<8x128xf32>
    %69 = vector.broadcast %15 : f32 to vector<8x128xf32>
    %70 = arith.mulf %34, %69 : vector<8x128xf32>
    %71 = arith.addf %68, %70 : vector<8x128xf32>
    %72 = vector.broadcast %18 : f32 to vector<8x128xf32>
    %73 = arith.mulf %36, %72 : vector<8x128xf32>
    %74 = arith.addf %71, %73 : vector<8x128xf32>
    %75 = vector.broadcast %21 : f32 to vector<8x128xf32>
    %76 = arith.addf %74, %75 : vector<8x128xf32>
    %77 = vector.broadcast %13 : f32 to vector<8x128xf32>
    %78 = arith.mulf %32, %77 : vector<8x128xf32>
    %79 = vector.broadcast %16 : f32 to vector<8x128xf32>
    %80 = arith.mulf %34, %79 : vector<8x128xf32>
    %81 = arith.addf %78, %80 : vector<8x128xf32>
    %82 = vector.broadcast %19 : f32 to vector<8x128xf32>
    %83 = arith.mulf %36, %82 : vector<8x128xf32>
    %84 = arith.addf %81, %83 : vector<8x128xf32>
    %85 = vector.broadcast %22 : f32 to vector<8x128xf32>
    %86 = arith.addf %84, %85 : vector<8x128xf32>
    %87 = vector.broadcast %14 : f32 to vector<8x128xf32>
    %88 = arith.mulf %32, %87 : vector<8x128xf32>
    %89 = vector.broadcast %17 : f32 to vector<8x128xf32>
    %90 = arith.mulf %34, %89 : vector<8x128xf32>
    %91 = arith.addf %88, %90 : vector<8x128xf32>
    %92 = vector.broadcast %20 : f32 to vector<8x128xf32>
    %93 = arith.mulf %36, %92 : vector<8x128xf32>
    %94 = arith.addf %91, %93 : vector<8x128xf32>
    %95 = vector.broadcast %23 : f32 to vector<8x128xf32>
    %96 = arith.addf %94, %95 : vector<8x128xf32>
    %cst = arith.constant 1.000000e-07 : f32
    %97 = vector.broadcast %cst : f32 to vector<8x128xf32>
    %98 = arith.addf %96, %97 : vector<8x128xf32>
    %99 = tpu.reciprocal %98 {approx = true} : vector<8x128xf32> -> vector<8x128xf32>
    %100 = arith.mulf %76, %99 : vector<8x128xf32>
    %cst_9 = arith.constant 1.000000e+00 : f32
    %101 = vector.broadcast %cst_9 : f32 to vector<8x128xf32>
    %102 = arith.addf %100, %101 : vector<8x128xf32>
    %103 = vector.broadcast %28 : f32 to vector<8x128xf32>
    %104 = arith.mulf %102, %103 : vector<8x128xf32>
    %cst_10 = arith.constant 1.000000e+00 : f32
    %105 = vector.broadcast %cst_10 : f32 to vector<8x128xf32>
    %106 = arith.subf %104, %105 : vector<8x128xf32>
    %cst_11 = arith.constant 5.000000e-01 : f32
    %107 = vector.broadcast %cst_11 : f32 to vector<8x128xf32>
    %108 = arith.mulf %106, %107 : vector<8x128xf32>
    %109 = arith.mulf %86, %99 : vector<8x128xf32>
    %cst_12 = arith.constant 1.000000e+00 : f32
    %110 = vector.broadcast %cst_12 : f32 to vector<8x128xf32>
    %111 = arith.addf %109, %110 : vector<8x128xf32>
    %112 = vector.broadcast %29 : f32 to vector<8x128xf32>
    %113 = arith.mulf %111, %112 : vector<8x128xf32>
    %cst_13 = arith.constant 1.000000e+00 : f32
    %114 = vector.broadcast %cst_13 : f32 to vector<8x128xf32>
    %115 = arith.subf %113, %114 : vector<8x128xf32>
    %cst_14 = arith.constant 5.000000e-01 : f32
    %116 = vector.broadcast %cst_14 : f32 to vector<8x128xf32>
    %117 = arith.mulf %115, %116 : vector<8x128xf32>
    %c3 = arith.constant 3 : index
    %c0_15 = arith.constant 0 : index
    %c0_16 = arith.constant 0 : index
    %118 = vector.load %arg2[%c3, %c0_15, %c0_16] : memref<14x8x128xf32, #tpu.memory_space<vmem>>, vector<1x8x128xf32>
    %119 = vector.shape_cast %118 : vector<1x8x128xf32> to vector<8x128xf32>
    %120 = math.exp %119 : vector<8x128xf32>
    %c4_17 = arith.constant 4 : index
    %c0_18 = arith.constant 0 : index
    %c0_19 = arith.constant 0 : index
    %121 = vector.load %arg2[%c4_17, %c0_18, %c0_19] : memref<14x8x128xf32, #tpu.memory_space<vmem>>, vector<1x8x128xf32>
    %122 = vector.shape_cast %121 : vector<1x8x128xf32> to vector<8x128xf32>
    %123 = math.exp %122 : vector<8x128xf32>
    %c5_20 = arith.constant 5 : index
    %c0_21 = arith.constant 0 : index
    %c0_22 = arith.constant 0 : index
    %124 = vector.load %arg2[%c5_20, %c0_21, %c0_22] : memref<14x8x128xf32, #tpu.memory_space<vmem>>, vector<1x8x128xf32>
    %125 = vector.shape_cast %124 : vector<1x8x128xf32> to vector<8x128xf32>
    %126 = math.exp %125 : vector<8x128xf32>
    %c6_23 = arith.constant 6 : index
    %c0_24 = arith.constant 0 : index
    %c0_25 = arith.constant 0 : index
    %127 = vector.load %arg2[%c6_23, %c0_24, %c0_25] : memref<14x8x128xf32, #tpu.memory_space<vmem>>, vector<1x8x128xf32>
    %128 = vector.shape_cast %127 : vector<1x8x128xf32> to vector<8x128xf32>
    %c7 = arith.constant 7 : index
    %c0_26 = arith.constant 0 : index
    %c0_27 = arith.constant 0 : index
    %129 = vector.load %arg2[%c7, %c0_26, %c0_27] : memref<14x8x128xf32, #tpu.memory_space<vmem>>, vector<1x8x128xf32>
    %130 = vector.shape_cast %129 : vector<1x8x128xf32> to vector<8x128xf32>
    %c8_28 = arith.constant 8 : index
    %c0_29 = arith.constant 0 : index
    %c0_30 = arith.constant 0 : index
    %131 = vector.load %arg2[%c8_28, %c0_29, %c0_30] : memref<14x8x128xf32, #tpu.memory_space<vmem>>, vector<1x8x128xf32>
    %132 = vector.shape_cast %131 : vector<1x8x128xf32> to vector<8x128xf32>
    %c9_31 = arith.constant 9 : index
    %c0_32 = arith.constant 0 : index
    %c0_33 = arith.constant 0 : index
    %133 = vector.load %arg2[%c9_31, %c0_32, %c0_33] : memref<14x8x128xf32, #tpu.memory_space<vmem>>, vector<1x8x128xf32>
    %134 = vector.shape_cast %133 : vector<1x8x128xf32> to vector<8x128xf32>
    %135 = arith.mulf %128, %128 : vector<8x128xf32>
    %136 = arith.mulf %130, %130 : vector<8x128xf32>
    %137 = arith.addf %135, %136 : vector<8x128xf32>
    %138 = arith.mulf %132, %132 : vector<8x128xf32>
    %139 = arith.addf %137, %138 : vector<8x128xf32>
    %140 = arith.mulf %134, %134 : vector<8x128xf32>
    %141 = arith.addf %139, %140 : vector<8x128xf32>
    %142 = math.rsqrt %141 : vector<8x128xf32>
    %143 = arith.mulf %128, %142 : vector<8x128xf32>
    %144 = arith.mulf %130, %142 : vector<8x128xf32>
    %145 = arith.mulf %132, %142 : vector<8x128xf32>
    %146 = arith.mulf %134, %142 : vector<8x128xf32>
    %147 = arith.mulf %145, %145 : vector<8x128xf32>
    %148 = arith.mulf %146, %146 : vector<8x128xf32>
    %149 = arith.addf %147, %148 : vector<8x128xf32>
    %cst_34 = arith.constant 2.000000e+00 : f32
    %150 = vector.broadcast %cst_34 : f32 to vector<8x128xf32>
    %151 = arith.mulf %150, %149 : vector<8x128xf32>
    %cst_35 = arith.constant 1.000000e+00 : f32
    %152 = vector.broadcast %cst_35 : f32 to vector<8x128xf32>
    %153 = arith.subf %152, %151 : vector<8x128xf32>
    %154 = arith.mulf %144, %145 : vector<8x128xf32>
    %155 = arith.mulf %143, %146 : vector<8x128xf32>
    %156 = arith.subf %154, %155 : vector<8x128xf32>
    %cst_36 = arith.constant 2.000000e+00 : f32
    %157 = vector.broadcast %cst_36 : f32 to vector<8x128xf32>
    %158 = arith.mulf %157, %156 : vector<8x128xf32>
    %159 = arith.mulf %144, %146 : vector<8x128xf32>
    %160 = arith.mulf %143, %145 : vector<8x128xf32>
    %161 = arith.addf %159, %160 : vector<8x128xf32>
    %cst_37 = arith.constant 2.000000e+00 : f32
    %162 = vector.broadcast %cst_37 : f32 to vector<8x128xf32>
    %163 = arith.mulf %162, %161 : vector<8x128xf32>
    %164 = arith.mulf %144, %145 : vector<8x128xf32>
    %165 = arith.mulf %143, %146 : vector<8x128xf32>
    %166 = arith.addf %164, %165 : vector<8x128xf32>
    %cst_38 = arith.constant 2.000000e+00 : f32
    %167 = vector.broadcast %cst_38 : f32 to vector<8x128xf32>
    %168 = arith.mulf %167, %166 : vector<8x128xf32>
    %169 = arith.mulf %144, %144 : vector<8x128xf32>
    %170 = arith.mulf %146, %146 : vector<8x128xf32>
    %171 = arith.addf %169, %170 : vector<8x128xf32>
    %cst_39 = arith.constant 2.000000e+00 : f32
    %172 = vector.broadcast %cst_39 : f32 to vector<8x128xf32>
    %173 = arith.mulf %172, %171 : vector<8x128xf32>
    %cst_40 = arith.constant 1.000000e+00 : f32
    %174 = vector.broadcast %cst_40 : f32 to vector<8x128xf32>
    %175 = arith.subf %174, %173 : vector<8x128xf32>
    %176 = arith.mulf %145, %146 : vector<8x128xf32>
    %177 = arith.mulf %143, %144 : vector<8x128xf32>
    %178 = arith.subf %176, %177 : vector<8x128xf32>
    %cst_41 = arith.constant 2.000000e+00 : f32
    %179 = vector.broadcast %cst_41 : f32 to vector<8x128xf32>
    %180 = arith.mulf %179, %178 : vector<8x128xf32>
    %181 = arith.mulf %144, %146 : vector<8x128xf32>
    %182 = arith.mulf %143, %145 : vector<8x128xf32>
    %183 = arith.subf %181, %182 : vector<8x128xf32>
    %cst_42 = arith.constant 2.000000e+00 : f32
    %184 = vector.broadcast %cst_42 : f32 to vector<8x128xf32>
    %185 = arith.mulf %184, %183 : vector<8x128xf32>
    %186 = arith.mulf %145, %146 : vector<8x128xf32>
    %187 = arith.mulf %143, %144 : vector<8x128xf32>
    %188 = arith.addf %186, %187 : vector<8x128xf32>
    %cst_43 = arith.constant 2.000000e+00 : f32
    %189 = vector.broadcast %cst_43 : f32 to vector<8x128xf32>
    %190 = arith.mulf %189, %188 : vector<8x128xf32>
    %191 = arith.mulf %144, %144 : vector<8x128xf32>
    %192 = arith.mulf %145, %145 : vector<8x128xf32>
    %193 = arith.addf %191, %192 : vector<8x128xf32>
    %cst_44 = arith.constant 2.000000e+00 : f32
    %194 = vector.broadcast %cst_44 : f32 to vector<8x128xf32>
    %195 = arith.mulf %194, %193 : vector<8x128xf32>
    %cst_45 = arith.constant 1.000000e+00 : f32
    %196 = vector.broadcast %cst_45 : f32 to vector<8x128xf32>
    %197 = arith.subf %196, %195 : vector<8x128xf32>
    %198 = arith.mulf %120, %120 : vector<8x128xf32>
    %199 = arith.mulf %123, %123 : vector<8x128xf32>
    %200 = arith.mulf %126, %126 : vector<8x128xf32>
    %201 = arith.mulf %153, %153 : vector<8x128xf32>
    %202 = arith.mulf %201, %198 : vector<8x128xf32>
    %203 = arith.mulf %158, %158 : vector<8x128xf32>
    %204 = arith.mulf %203, %199 : vector<8x128xf32>
    %205 = arith.addf %202, %204 : vector<8x128xf32>
    %206 = arith.mulf %163, %163 : vector<8x128xf32>
    %207 = arith.mulf %206, %200 : vector<8x128xf32>
    %208 = arith.addf %205, %207 : vector<8x128xf32>
    %209 = arith.mulf %153, %168 : vector<8x128xf32>
    %210 = arith.mulf %209, %198 : vector<8x128xf32>
    %211 = arith.mulf %158, %175 : vector<8x128xf32>
    %212 = arith.mulf %211, %199 : vector<8x128xf32>
    %213 = arith.addf %210, %212 : vector<8x128xf32>
    %214 = arith.mulf %163, %180 : vector<8x128xf32>
    %215 = arith.mulf %214, %200 : vector<8x128xf32>
    %216 = arith.addf %213, %215 : vector<8x128xf32>
    %217 = arith.mulf %153, %185 : vector<8x128xf32>
    %218 = arith.mulf %217, %198 : vector<8x128xf32>
    %219 = arith.mulf %158, %190 : vector<8x128xf32>
    %220 = arith.mulf %219, %199 : vector<8x128xf32>
    %221 = arith.addf %218, %220 : vector<8x128xf32>
    %222 = arith.mulf %163, %197 : vector<8x128xf32>
    %223 = arith.mulf %222, %200 : vector<8x128xf32>
    %224 = arith.addf %221, %223 : vector<8x128xf32>
    %225 = arith.mulf %168, %168 : vector<8x128xf32>
    %226 = arith.mulf %225, %198 : vector<8x128xf32>
    %227 = arith.mulf %175, %175 : vector<8x128xf32>
    %228 = arith.mulf %227, %199 : vector<8x128xf32>
    %229 = arith.addf %226, %228 : vector<8x128xf32>
    %230 = arith.mulf %180, %180 : vector<8x128xf32>
    %231 = arith.mulf %230, %200 : vector<8x128xf32>
    %232 = arith.addf %229, %231 : vector<8x128xf32>
    %233 = arith.mulf %168, %185 : vector<8x128xf32>
    %234 = arith.mulf %233, %198 : vector<8x128xf32>
    %235 = arith.mulf %175, %190 : vector<8x128xf32>
    %236 = arith.mulf %235, %199 : vector<8x128xf32>
    %237 = arith.addf %234, %236 : vector<8x128xf32>
    %238 = arith.mulf %180, %197 : vector<8x128xf32>
    %239 = arith.mulf %238, %200 : vector<8x128xf32>
    %240 = arith.addf %237, %239 : vector<8x128xf32>
    %241 = arith.mulf %185, %185 : vector<8x128xf32>
    %242 = arith.mulf %241, %198 : vector<8x128xf32>
    %243 = arith.mulf %190, %190 : vector<8x128xf32>
    %244 = arith.mulf %243, %199 : vector<8x128xf32>
    %245 = arith.addf %242, %244 : vector<8x128xf32>
    %246 = arith.mulf %197, %197 : vector<8x128xf32>
    %247 = arith.mulf %246, %200 : vector<8x128xf32>
    %248 = arith.addf %245, %247 : vector<8x128xf32>
    %cst_46 = arith.constant 1.300000e+00 : f32
    %249 = arith.mulf %cst_46, %26 : f32
    %cst_47 = arith.constant 1.300000e+00 : f32
    %250 = arith.mulf %cst_47, %27 : f32
    %251 = tpu.reciprocal %66 {approx = true} : vector<8x128xf32> -> vector<8x128xf32>
    %252 = arith.mulf %46, %251 : vector<8x128xf32>
    %cst_48 = arith.constant 0.000000e+00 : f32
    %253 = arith.subf %cst_48, %249 : f32
    %254 = vector.broadcast %253 : f32 to vector<8x128xf32>
    %255 = arith.maximumf %254, %252 : vector<8x128xf32>
    %256 = vector.broadcast %249 : f32 to vector<8x128xf32>
    %257 = arith.minimumf %256, %255 : vector<8x128xf32>
    %258 = arith.mulf %257, %66 : vector<8x128xf32>
    %259 = arith.mulf %56, %251 : vector<8x128xf32>
    %cst_49 = arith.constant 0.000000e+00 : f32
    %260 = arith.subf %cst_49, %250 : f32
    %261 = vector.broadcast %260 : f32 to vector<8x128xf32>
    %262 = arith.maximumf %261, %259 : vector<8x128xf32>
    %263 = vector.broadcast %250 : f32 to vector<8x128xf32>
    %264 = arith.minimumf %263, %262 : vector<8x128xf32>
    %265 = arith.mulf %264, %66 : vector<8x128xf32>
    %266 = arith.mulf %251, %251 : vector<8x128xf32>
    %cst_50 = arith.constant 0.000000e+00 : f32
    %267 = vector.broadcast %cst_50 : f32 to vector<8x128xf32>
    %268 = vector.broadcast %24 : f32 to vector<8x128xf32>
    %269 = arith.mulf %268, %251 : vector<8x128xf32>
    %cst_51 = arith.constant 0.000000e+00 : f32
    %270 = arith.subf %cst_51, %24 : f32
    %271 = vector.broadcast %270 : f32 to vector<8x128xf32>
    %272 = arith.mulf %271, %258 : vector<8x128xf32>
    %273 = arith.mulf %272, %266 : vector<8x128xf32>
    %274 = vector.broadcast %25 : f32 to vector<8x128xf32>
    %275 = arith.mulf %274, %251 : vector<8x128xf32>
    %cst_52 = arith.constant 0.000000e+00 : f32
    %276 = arith.subf %cst_52, %25 : f32
    %277 = vector.broadcast %276 : f32 to vector<8x128xf32>
    %278 = arith.mulf %277, %265 : vector<8x128xf32>
    %279 = arith.mulf %278, %266 : vector<8x128xf32>
    %280 = vector.broadcast %0 : f32 to vector<8x128xf32>
    %281 = arith.mulf %269, %280 : vector<8x128xf32>
    %282 = vector.broadcast %1 : f32 to vector<8x128xf32>
    %283 = arith.mulf %267, %282 : vector<8x128xf32>
    %284 = arith.addf %281, %283 : vector<8x128xf32>
    %285 = vector.broadcast %2 : f32 to vector<8x128xf32>
    %286 = arith.mulf %273, %285 : vector<8x128xf32>
    %287 = arith.addf %284, %286 : vector<8x128xf32>
    %288 = vector.broadcast %3 : f32 to vector<8x128xf32>
    %289 = arith.mulf %269, %288 : vector<8x128xf32>
    %290 = vector.broadcast %4 : f32 to vector<8x128xf32>
    %291 = arith.mulf %267, %290 : vector<8x128xf32>
    %292 = arith.addf %289, %291 : vector<8x128xf32>
    %293 = vector.broadcast %5 : f32 to vector<8x128xf32>
    %294 = arith.mulf %273, %293 : vector<8x128xf32>
    %295 = arith.addf %292, %294 : vector<8x128xf32>
    %296 = vector.broadcast %6 : f32 to vector<8x128xf32>
    %297 = arith.mulf %269, %296 : vector<8x128xf32>
    %298 = vector.broadcast %7 : f32 to vector<8x128xf32>
    %299 = arith.mulf %267, %298 : vector<8x128xf32>
    %300 = arith.addf %297, %299 : vector<8x128xf32>
    %301 = vector.broadcast %8 : f32 to vector<8x128xf32>
    %302 = arith.mulf %273, %301 : vector<8x128xf32>
    %303 = arith.addf %300, %302 : vector<8x128xf32>
    %304 = vector.broadcast %0 : f32 to vector<8x128xf32>
    %305 = arith.mulf %267, %304 : vector<8x128xf32>
    %306 = vector.broadcast %1 : f32 to vector<8x128xf32>
    %307 = arith.mulf %275, %306 : vector<8x128xf32>
    %308 = arith.addf %305, %307 : vector<8x128xf32>
    %309 = vector.broadcast %2 : f32 to vector<8x128xf32>
    %310 = arith.mulf %279, %309 : vector<8x128xf32>
    %311 = arith.addf %308, %310 : vector<8x128xf32>
    %312 = vector.broadcast %3 : f32 to vector<8x128xf32>
    %313 = arith.mulf %267, %312 : vector<8x128xf32>
    %314 = vector.broadcast %4 : f32 to vector<8x128xf32>
    %315 = arith.mulf %275, %314 : vector<8x128xf32>
    %316 = arith.addf %313, %315 : vector<8x128xf32>
    %317 = vector.broadcast %5 : f32 to vector<8x128xf32>
    %318 = arith.mulf %279, %317 : vector<8x128xf32>
    %319 = arith.addf %316, %318 : vector<8x128xf32>
    %320 = vector.broadcast %6 : f32 to vector<8x128xf32>
    %321 = arith.mulf %267, %320 : vector<8x128xf32>
    %322 = vector.broadcast %7 : f32 to vector<8x128xf32>
    %323 = arith.mulf %275, %322 : vector<8x128xf32>
    %324 = arith.addf %321, %323 : vector<8x128xf32>
    %325 = vector.broadcast %8 : f32 to vector<8x128xf32>
    %326 = arith.mulf %279, %325 : vector<8x128xf32>
    %327 = arith.addf %324, %326 : vector<8x128xf32>
    %328 = arith.mulf %287, %208 : vector<8x128xf32>
    %329 = arith.mulf %295, %216 : vector<8x128xf32>
    %330 = arith.addf %328, %329 : vector<8x128xf32>
    %331 = arith.mulf %303, %224 : vector<8x128xf32>
    %332 = arith.addf %330, %331 : vector<8x128xf32>
    %333 = arith.mulf %287, %216 : vector<8x128xf32>
    %334 = arith.mulf %295, %232 : vector<8x128xf32>
    %335 = arith.addf %333, %334 : vector<8x128xf32>
    %336 = arith.mulf %303, %240 : vector<8x128xf32>
    %337 = arith.addf %335, %336 : vector<8x128xf32>
    %338 = arith.mulf %287, %224 : vector<8x128xf32>
    %339 = arith.mulf %295, %240 : vector<8x128xf32>
    %340 = arith.addf %338, %339 : vector<8x128xf32>
    %341 = arith.mulf %303, %248 : vector<8x128xf32>
    %342 = arith.addf %340, %341 : vector<8x128xf32>
    %343 = arith.mulf %311, %208 : vector<8x128xf32>
    %344 = arith.mulf %319, %216 : vector<8x128xf32>
    %345 = arith.addf %343, %344 : vector<8x128xf32>
    %346 = arith.mulf %327, %224 : vector<8x128xf32>
    %347 = arith.addf %345, %346 : vector<8x128xf32>
    %348 = arith.mulf %311, %216 : vector<8x128xf32>
    %349 = arith.mulf %319, %232 : vector<8x128xf32>
    %350 = arith.addf %348, %349 : vector<8x128xf32>
    %351 = arith.mulf %327, %240 : vector<8x128xf32>
    %352 = arith.addf %350, %351 : vector<8x128xf32>
    %353 = arith.mulf %311, %224 : vector<8x128xf32>
    %354 = arith.mulf %319, %240 : vector<8x128xf32>
    %355 = arith.addf %353, %354 : vector<8x128xf32>
    %356 = arith.mulf %327, %248 : vector<8x128xf32>
    %357 = arith.addf %355, %356 : vector<8x128xf32>
    %358 = arith.mulf %332, %287 : vector<8x128xf32>
    %359 = arith.mulf %337, %295 : vector<8x128xf32>
    %360 = arith.addf %358, %359 : vector<8x128xf32>
    %361 = arith.mulf %342, %303 : vector<8x128xf32>
    %362 = arith.addf %360, %361 : vector<8x128xf32>
    %cst_53 = arith.constant 3.000000e-01 : f32
    %363 = vector.broadcast %cst_53 : f32 to vector<8x128xf32>
    %364 = arith.addf %362, %363 : vector<8x128xf32>
    %365 = arith.mulf %332, %311 : vector<8x128xf32>
    %366 = arith.mulf %337, %319 : vector<8x128xf32>
    %367 = arith.addf %365, %366 : vector<8x128xf32>
    %368 = arith.mulf %342, %327 : vector<8x128xf32>
    %369 = arith.addf %367, %368 : vector<8x128xf32>
    %370 = arith.mulf %347, %311 : vector<8x128xf32>
    %371 = arith.mulf %352, %319 : vector<8x128xf32>
    %372 = arith.addf %370, %371 : vector<8x128xf32>
    %373 = arith.mulf %357, %327 : vector<8x128xf32>
    %374 = arith.addf %372, %373 : vector<8x128xf32>
    %cst_54 = arith.constant 3.000000e-01 : f32
    %375 = vector.broadcast %cst_54 : f32 to vector<8x128xf32>
    %376 = arith.addf %374, %375 : vector<8x128xf32>
    %377 = arith.mulf %364, %376 : vector<8x128xf32>
    %378 = arith.mulf %369, %369 : vector<8x128xf32>
    %379 = arith.subf %377, %378 : vector<8x128xf32>
    %c1024_i32 = arith.constant 1024 : i32
    %380 = arith.muli %arg0, %c1024_i32 : i32
    %381 = tpu.iota {dimensions = array<i32: 0>} : vector<8x128xi32>
    %c128_i32 = arith.constant 128 : i32
    %382 = vector.broadcast %c128_i32 : i32 to vector<8x128xi32>
    %383 = arith.muli %381, %382 : vector<8x128xi32>
    %384 = vector.broadcast %380 : i32 to vector<8x128xi32>
    %385 = arith.addi %384, %383 : vector<8x128xi32>
    %386 = tpu.iota {dimensions = array<i32: 1>} : vector<8x128xi32>
    %387 = arith.addi %385, %386 : vector<8x128xi32>
    %388 = arith.sitofp %387 : vector<8x128xi32> to vector<8x128xf32>
    %cst_55 = arith.constant 2.000000e-01 : f32
    %389 = vector.broadcast %cst_55 : f32 to vector<8x128xf32>
    %390 = arith.cmpf ogt, %66, %389 : vector<8x128xf32>
    %cst_56 = arith.constant 0.000000e+00 : f32
    %391 = vector.broadcast %cst_56 : f32 to vector<8x128xf32>
    %392 = arith.cmpf ogt, %379, %391 : vector<8x128xf32>
    %393 = arith.andi %390, %392 : vector<8x128xi1>
    %394 = vector.broadcast %30 : f32 to vector<8x128xf32>
    %395 = arith.cmpf olt, %388, %394 : vector<8x128xf32>
    %396 = arith.andi %393, %395 : vector<8x128xi1>
    %cst_57 = arith.constant 0.000000e+00 : f32
    %397 = vector.broadcast %cst_57 : f32 to vector<8x128xf32>
    %398 = arith.cmpf ogt, %379, %397 : vector<8x128xf32>
    %cst_58 = arith.constant 1.000000e+00 : f32
    %399 = vector.broadcast %cst_58 : f32 to vector<8x128xf32>
    %400 = arith.select %398, %379, %399 : vector<8x128xi1>, vector<8x128xf32>
    %401 = tpu.reciprocal %400 {approx = true} : vector<8x128xf32> -> vector<8x128xf32>
    %402 = arith.mulf %376, %401 : vector<8x128xf32>
    %cst_59 = arith.constant -5.000000e-01 : f32
    %403 = vector.broadcast %cst_59 : f32 to vector<8x128xf32>
    %404 = arith.mulf %403, %402 : vector<8x128xf32>
    %cst_60 = arith.constant 0.000000e+00 : f32
    %405 = vector.broadcast %cst_60 : f32 to vector<8x128xf32>
    %406 = arith.select %396, %404, %405 : vector<8x128xi1>, vector<8x128xf32>
    %407 = arith.mulf %369, %401 : vector<8x128xf32>
    %cst_61 = arith.constant 0.000000e+00 : f32
    %408 = vector.broadcast %cst_61 : f32 to vector<8x128xf32>
    %409 = arith.select %396, %407, %408 : vector<8x128xi1>, vector<8x128xf32>
    %410 = arith.mulf %364, %401 : vector<8x128xf32>
    %cst_62 = arith.constant -5.000000e-01 : f32
    %411 = vector.broadcast %cst_62 : f32 to vector<8x128xf32>
    %412 = arith.mulf %411, %410 : vector<8x128xf32>
    %cst_63 = arith.constant 0.000000e+00 : f32
    %413 = vector.broadcast %cst_63 : f32 to vector<8x128xf32>
    %414 = arith.select %396, %412, %413 : vector<8x128xi1>, vector<8x128xf32>
    %c11 = arith.constant 11 : index
    %c0_64 = arith.constant 0 : index
    %c0_65 = arith.constant 0 : index
    %415 = vector.load %arg2[%c11, %c0_64, %c0_65] : memref<14x8x128xf32, #tpu.memory_space<vmem>>, vector<1x8x128xf32>
    %416 = vector.shape_cast %415 : vector<1x8x128xf32> to vector<8x128xf32>
    %cst_66 = arith.constant 0.282094806 : f32
    %417 = vector.broadcast %cst_66 : f32 to vector<8x128xf32>
    %418 = arith.mulf %417, %416 : vector<8x128xf32>
    %cst_67 = arith.constant 5.000000e-01 : f32
    %419 = vector.broadcast %cst_67 : f32 to vector<8x128xf32>
    %420 = arith.addf %418, %419 : vector<8x128xf32>
    %cst_68 = arith.constant 0.000000e+00 : f32
    %421 = vector.broadcast %cst_68 : f32 to vector<8x128xf32>
    %422 = arith.maximumf %420, %421 : vector<8x128xf32>
    %c12_69 = arith.constant 12 : index
    %c0_70 = arith.constant 0 : index
    %c0_71 = arith.constant 0 : index
    %423 = vector.load %arg2[%c12_69, %c0_70, %c0_71] : memref<14x8x128xf32, #tpu.memory_space<vmem>>, vector<1x8x128xf32>
    %424 = vector.shape_cast %423 : vector<1x8x128xf32> to vector<8x128xf32>
    %cst_72 = arith.constant 0.282094806 : f32
    %425 = vector.broadcast %cst_72 : f32 to vector<8x128xf32>
    %426 = arith.mulf %425, %424 : vector<8x128xf32>
    %cst_73 = arith.constant 5.000000e-01 : f32
    %427 = vector.broadcast %cst_73 : f32 to vector<8x128xf32>
    %428 = arith.addf %426, %427 : vector<8x128xf32>
    %cst_74 = arith.constant 0.000000e+00 : f32
    %429 = vector.broadcast %cst_74 : f32 to vector<8x128xf32>
    %430 = arith.maximumf %428, %429 : vector<8x128xf32>
    %c13_75 = arith.constant 13 : index
    %c0_76 = arith.constant 0 : index
    %c0_77 = arith.constant 0 : index
    %431 = vector.load %arg2[%c13_75, %c0_76, %c0_77] : memref<14x8x128xf32, #tpu.memory_space<vmem>>, vector<1x8x128xf32>
    %432 = vector.shape_cast %431 : vector<1x8x128xf32> to vector<8x128xf32>
    %cst_78 = arith.constant 0.282094806 : f32
    %433 = vector.broadcast %cst_78 : f32 to vector<8x128xf32>
    %434 = arith.mulf %433, %432 : vector<8x128xf32>
    %cst_79 = arith.constant 5.000000e-01 : f32
    %435 = vector.broadcast %cst_79 : f32 to vector<8x128xf32>
    %436 = arith.addf %434, %435 : vector<8x128xf32>
    %cst_80 = arith.constant 0.000000e+00 : f32
    %437 = vector.broadcast %cst_80 : f32 to vector<8x128xf32>
    %438 = arith.maximumf %436, %437 : vector<8x128xf32>
    %c10_81 = arith.constant 10 : index
    %c0_82 = arith.constant 0 : index
    %c0_83 = arith.constant 0 : index
    %439 = vector.load %arg2[%c10_81, %c0_82, %c0_83] : memref<14x8x128xf32, #tpu.memory_space<vmem>>, vector<1x8x128xf32>
    %440 = vector.shape_cast %439 : vector<1x8x128xf32> to vector<8x128xf32>
    %cst_84 = arith.constant 0.000000e+00 : f32
    %441 = vector.broadcast %cst_84 : f32 to vector<8x128xf32>
    %442 = arith.subf %441, %440 : vector<8x128xf32>
    %443 = math.exp %442 : vector<8x128xf32>
    %cst_85 = arith.constant 1.000000e+00 : f32
    %444 = vector.broadcast %cst_85 : f32 to vector<8x128xf32>
    %445 = arith.addf %444, %443 : vector<8x128xf32>
    %cst_86 = arith.constant 1.000000e+00 : f32
    %446 = vector.broadcast %cst_86 : f32 to vector<8x128xf32>
    %447 = arith.divf %446, %445 : vector<8x128xf32>
    %cst_87 = arith.constant 0.000000e+00 : f32
    %448 = vector.broadcast %cst_87 : f32 to vector<8x128xf32>
    %449 = arith.select %396, %108, %448 : vector<8x128xi1>, vector<8x128xf32>
    %c0_88 = arith.constant 0 : index
    %c0_89 = arith.constant 0 : index
    %c0_90 = arith.constant 0 : index
    %450 = vector.load %arg3[%c0_88, %c0_89, %c0_90] : memref<10x8x128xf32, #tpu.memory_space<vmem>>, vector<1x8x128xf32>
    %451 = vector.shape_cast %450 : vector<1x8x128xf32> to vector<8x128xf32>
    %452 = vector.shape_cast %449 : vector<8x128xf32> to vector<1x8x128xf32>
    tpu.vector_store %arg3[%c0_88, %c0_89, %c0_90], %452 {strides = array<i32>} : memref<10x8x128xf32, #tpu.memory_space<vmem>>, vector<1x8x128xf32>,
    %cst_91 = arith.constant 0.000000e+00 : f32
    %453 = vector.broadcast %cst_91 : f32 to vector<8x128xf32>
    %454 = arith.select %396, %117, %453 : vector<8x128xi1>, vector<8x128xf32>
    %c1_92 = arith.constant 1 : index
    %c0_93 = arith.constant 0 : index
    %c0_94 = arith.constant 0 : index
    %455 = vector.load %arg3[%c1_92, %c0_93, %c0_94] : memref<10x8x128xf32, #tpu.memory_space<vmem>>, vector<1x8x128xf32>
    %456 = vector.shape_cast %455 : vector<1x8x128xf32> to vector<8x128xf32>
    %457 = vector.shape_cast %454 : vector<8x128xf32> to vector<1x8x128xf32>
    tpu.vector_store %arg3[%c1_92, %c0_93, %c0_94], %457 {strides = array<i32>} : memref<10x8x128xf32, #tpu.memory_space<vmem>>, vector<1x8x128xf32>,
    %c2_95 = arith.constant 2 : index
    %c0_96 = arith.constant 0 : index
    %c0_97 = arith.constant 0 : index
    %458 = vector.load %arg3[%c2_95, %c0_96, %c0_97] : memref<10x8x128xf32, #tpu.memory_space<vmem>>, vector<1x8x128xf32>
    %459 = vector.shape_cast %458 : vector<1x8x128xf32> to vector<8x128xf32>
    %460 = vector.shape_cast %406 : vector<8x128xf32> to vector<1x8x128xf32>
    tpu.vector_store %arg3[%c2_95, %c0_96, %c0_97], %460 {strides = array<i32>} : memref<10x8x128xf32, #tpu.memory_space<vmem>>, vector<1x8x128xf32>,
    %c3_98 = arith.constant 3 : index
    %c0_99 = arith.constant 0 : index
    %c0_100 = arith.constant 0 : index
    %461 = vector.load %arg3[%c3_98, %c0_99, %c0_100] : memref<10x8x128xf32, #tpu.memory_space<vmem>>, vector<1x8x128xf32>
    %462 = vector.shape_cast %461 : vector<1x8x128xf32> to vector<8x128xf32>
    %463 = vector.shape_cast %409 : vector<8x128xf32> to vector<1x8x128xf32>
    tpu.vector_store %arg3[%c3_98, %c0_99, %c0_100], %463 {strides = array<i32>} : memref<10x8x128xf32, #tpu.memory_space<vmem>>, vector<1x8x128xf32>,
    %c4_101 = arith.constant 4 : index
    %c0_102 = arith.constant 0 : index
    %c0_103 = arith.constant 0 : index
    %464 = vector.load %arg3[%c4_101, %c0_102, %c0_103] : memref<10x8x128xf32, #tpu.memory_space<vmem>>, vector<1x8x128xf32>
    %465 = vector.shape_cast %464 : vector<1x8x128xf32> to vector<8x128xf32>
    %466 = vector.shape_cast %414 : vector<8x128xf32> to vector<1x8x128xf32>
    tpu.vector_store %arg3[%c4_101, %c0_102, %c0_103], %466 {strides = array<i32>} : memref<10x8x128xf32, #tpu.memory_space<vmem>>, vector<1x8x128xf32>,
    %c5_104 = arith.constant 5 : index
    %c0_105 = arith.constant 0 : index
    %c0_106 = arith.constant 0 : index
    %467 = vector.load %arg3[%c5_104, %c0_105, %c0_106] : memref<10x8x128xf32, #tpu.memory_space<vmem>>, vector<1x8x128xf32>
    %468 = vector.shape_cast %467 : vector<1x8x128xf32> to vector<8x128xf32>
    %469 = vector.shape_cast %422 : vector<8x128xf32> to vector<1x8x128xf32>
    tpu.vector_store %arg3[%c5_104, %c0_105, %c0_106], %469 {strides = array<i32>} : memref<10x8x128xf32, #tpu.memory_space<vmem>>, vector<1x8x128xf32>,
    %c6_107 = arith.constant 6 : index
    %c0_108 = arith.constant 0 : index
    %c0_109 = arith.constant 0 : index
    %470 = vector.load %arg3[%c6_107, %c0_108, %c0_109] : memref<10x8x128xf32, #tpu.memory_space<vmem>>, vector<1x8x128xf32>
    %471 = vector.shape_cast %470 : vector<1x8x128xf32> to vector<8x128xf32>
    %472 = vector.shape_cast %430 : vector<8x128xf32> to vector<1x8x128xf32>
    tpu.vector_store %arg3[%c6_107, %c0_108, %c0_109], %472 {strides = array<i32>} : memref<10x8x128xf32, #tpu.memory_space<vmem>>, vector<1x8x128xf32>,
    %c7_110 = arith.constant 7 : index
    %c0_111 = arith.constant 0 : index
    %c0_112 = arith.constant 0 : index
    %473 = vector.load %arg3[%c7_110, %c0_111, %c0_112] : memref<10x8x128xf32, #tpu.memory_space<vmem>>, vector<1x8x128xf32>
    %474 = vector.shape_cast %473 : vector<1x8x128xf32> to vector<8x128xf32>
    %475 = vector.shape_cast %438 : vector<8x128xf32> to vector<1x8x128xf32>
    tpu.vector_store %arg3[%c7_110, %c0_111, %c0_112], %475 {strides = array<i32>} : memref<10x8x128xf32, #tpu.memory_space<vmem>>, vector<1x8x128xf32>,
    %cst_113 = arith.constant 0.000000e+00 : f32
    %476 = vector.broadcast %cst_113 : f32 to vector<8x128xf32>
    %477 = arith.select %396, %447, %476 : vector<8x128xi1>, vector<8x128xf32>
    %c8_114 = arith.constant 8 : index
    %c0_115 = arith.constant 0 : index
    %c0_116 = arith.constant 0 : index
    %478 = vector.load %arg3[%c8_114, %c0_115, %c0_116] : memref<10x8x128xf32, #tpu.memory_space<vmem>>, vector<1x8x128xf32>
    %479 = vector.shape_cast %478 : vector<1x8x128xf32> to vector<8x128xf32>
    %480 = vector.shape_cast %477 : vector<8x128xf32> to vector<1x8x128xf32>
    tpu.vector_store %arg3[%c8_114, %c0_115, %c0_116], %480 {strides = array<i32>} : memref<10x8x128xf32, #tpu.memory_space<vmem>>, vector<1x8x128xf32>,
    %cst_117 = arith.constant 1.000000e+10 : f32
    %481 = vector.broadcast %cst_117 : f32 to vector<8x128xf32>
    %482 = arith.select %396, %66, %481 : vector<8x128xi1>, vector<8x128xf32>
    %c9_118 = arith.constant 9 : index
    %c0_119 = arith.constant 0 : index
    %c0_120 = arith.constant 0 : index
    %483 = vector.load %arg3[%c9_118, %c0_119, %c0_120] : memref<10x8x128xf32, #tpu.memory_space<vmem>>, vector<1x8x128xf32>
    %484 = vector.shape_cast %483 : vector<1x8x128xf32> to vector<8x128xf32>
    %485 = vector.shape_cast %482 : vector<8x128xf32> to vector<1x8x128xf32>
    tpu.vector_store %arg3[%c9_118, %c0_119, %c0_120], %485 {strides = array<i32>} : memref<10x8x128xf32, #tpu.memory_space<vmem>>, vector<1x8x128xf32>,
    return
  }
  func.func @transform_0(%arg0: i32) -> i32 {
    %c0_i32 = arith.constant 0 : i32
    %c0_i32_0 = arith.constant 0 : i32
    return %c0_i32 : i32
  }
  func.func @transform_1(%arg0: i32) -> (i32, i32, i32) {
    %c0_i32 = arith.constant 0 : i32
    %c0_i32_0 = arith.constant 0 : i32
    %c0_i32_1 = arith.constant 0 : i32
    return %c0_i32, %arg0, %c0_i32_0 : i32, i32, i32
  }
  func.func @transform_2(%arg0: i32) -> (i32, i32, i32) {
    %c0_i32 = arith.constant 0 : i32
    %c0_i32_0 = arith.constant 0 : i32
    %c0_i32_1 = arith.constant 0 : i32
    return %c0_i32, %arg0, %c0_i32_0 : i32, i32, i32
  }
}

</mosaic_0001>

<bundles_post_ra>
// kernel: tpu_custom_call.1
= control target key start
LH: loop header
LB: loop body
LE: loop exit
PB: predicated region body
PF: predicated region fallthrough
CT: control target
= control target key end

     0   :  { %7 = vsyncpa [#allocation5], 0  ;;  %s897_s0 = inlined_call_operand.hbm [shape: f32[48], index: 0, kind: input, shape index: {}]   ;;  %s898_s1 = inlined_call_operand.hbm [shape: f32[14,8,128], index: 1, kind: input, shape index: {}]   ;;  %s899_s2 = inlined_call_operand.hbm [shape: f32[10,8,128], index: 2, kind: output, shape index: {}]  }
   0x1   :  { %8 = vsyncpa [#allocation3], 0 }
   0x2   :  { %9 = vsyncpa [#allocation4], 0  ;;  %s569_s9 = smov [#allocation2]   ;;  %s570_s12 = smov [#allocation6]  }
   0x3   :  { %17 = dma.hbm_to_smem %s897_s0, 16, %s569_s9, [#allocation5]  }
   0x4   :  { %s23_s13 = sshll.u32 %s570_s12, 4  ;;  %s24_s13 = int_to_ptr.vmem [resolvable:$true] %s23_s13 }
   0x5   :  { %s531_s14 = scalar_lea.vmem %s24_s13, 1792  ;;  %p536_p1 = scmp.lt.s32.totalorder %s24_s13, %s24_s13 }
   0x6   :  { %p532_p0 = scmp.ne.s32.totalorder %s24_s13, %s531_s14  ;;  %p537_p2 = scmp.lt.s32.totalorder %s531_s14, %s531_s14 }
   0x8   :  { %p538_p3 = por %p537_p2, %p536_p1 }
   0xa   :  { %p539_p4 = pnand %p538_p3, %p532_p0 }
   0xc   :  { %542 = shalt.err (!%p539_p4)
}
   0xd   :  { %s571_s15 = smov 128   ;;  %s572_s16 = smov 8  }
   0xe   :  { %29 = dma.hbm_to_vmem [thread:$0]  %s898_s1, 1792, %s24_s13, [#allocation3], %s571_s15, %s571_s15, %s572_s16  }
   0xf   :  { %563 = dma.done.wait [#allocation5], 16  }
  0x10   :  { %564 = vsyncadd [#allocation5], 4294967280 }
  0x11   :  { %565 = dma.done.wait [#allocation3], 1792  }
  0x12   :  { %566 = vsyncadd [#allocation3], 4294965504 }
  0x13   :  { %36 = sfence }
  0x14   :  { %s37_s0 = sld [smem:[#allocation2]]  ;;  %v148_v0 = vld [vmem:[#allocation6 + $0x18] sm:$0xff]  ;;  %v152_v1 = vld [vmem:[#allocation6 + $0x20] sm:$0xff]  ;;  %v156_v3 = vld [vmem:[#allocation6 + $0x28] sm:$0xff]  ;;  %v371_v18 = vlaneseq }
  0x15   :  { %s460_s19 = sld [smem:[#allocation2 + $0x1]]  ;;  %v149_v2 = vmul.f32 1.442695, %v148_v0  ;;  %v153_v4 = vmul.f32 1.442695, %v152_v1  ;;  %v598_v5 = vld [vmem:[#allocation6 + $0x30] sm:$0xff] }
  0x16   :  { %s461_s20 = sld [smem:[#allocation2 + $0x2]]  ;;  %v600_v6 = vld [vmem:[#allocation6 + $0x38] sm:$0xff]  ;;  %v602_v7 = vld [vmem:[#allocation6 + $0x40] sm:$0xff]  ;;  %v604_v8 = vld [vmem:[#allocation6 + $0x48] sm:$0xff]  ;;  %v167_v9 = vmul.f32 %v598_v5, %v598_v5  ;;  %v157_v12 = vmul.f32 1.442695, %v156_v3 }
  0x17   :  { %s462_s21 = sld [smem:[#allocation2 + $0x4]]  ;;  %v168_v10 = vmul.f32 %v600_v6, %v600_v6  ;;  %v397_v11 = vld [vmem:[#allocation6 + $0x58] sm:$0xff]  ;;  %v170_v13 = vmul.f32 %v602_v7, %v602_v7  ;;  %v172_v16 = vmul.f32 %v604_v8, %v604_v8  ;;  %v620_v17 = vld [vmem:[#allocation6] sm:$0xff]  ;;  %497 = vpow2.f32 %v149_v2  ;;  %v630_v23 = vld [vmem:[#allocation6 + $0x8] sm:$0xff] }
  0x18   :  { %s463_s22 = sld [smem:[#allocation2 + $0x5]]  ;;  %v398_v19 = vmul.f32 0.2820948, %v397_v11  ;;  %499 = vpow2.f32 %v153_v4  ;;  %v654_v34 = vld [vmem:[#allocation6 + $0x10] sm:$0xff]  ;;  %v661_v37 = vshrl.u32 %v371_v18, 7  ;;  %v402_v39 = vld [vmem:[#allocation6 + $0x60] sm:$0xff] }
  0x19   :  { %s464_s1 = sld [smem:[#allocation2 + $0x6]]  ;;  %v169_v15 = vadd.f32 %v168_v10, %v167_v9  ;;  %501 = vpow2.f32 %v157_v12  ;;  %v407_v48 = vld [vmem:[#allocation6 + $0x68] sm:$0xff]  ;;  %v685_v51 = vand.u32 127, %v371_v18  ;;  %v403_v52 = vmul.f32 0.2820948, %v402_v39  ;;  %v412_v1 = vld [vmem:[#allocation6 + $0x50] sm:$0xff] }
  0x1a   :  { %s612_s23 = sld [smem:[#allocation2 + $0x8]]  ;;  %v614_v14 = vstv %s37_s0  ;;  %v399_v33 = vadd.f32 0.5, %v398_v19  ;;  %v373_v50 = vmul.u32 128, %v661_v37  ;;  %v408_v60 = vmul.f32 0.2820948, %v407_v48 }
  0x1b   :  { %s618_s24 = sld [smem:[#allocation2 + $0x9]]  ;;  %v624_v20 = vstv %s460_s19  ;;  %v171_v22 = vadd.f32 %v170_v13, %v169_v15  ;;  %v74_v24 = vmul.f32 %v614_v14, %v620_v17  ;;  %v682_v49 = vmul.f32 0.0, %v614_v14 }
  0x1c   :  { %s622_s25 = sld [smem:[#allocation2 + $0xa]]  ;;  %v626_v21 = vstv %s461_s20  ;;  %v84_v30 = vmul.f32 %v624_v20, %v620_v17  ;;  %v400_v47 = vmax.f32 %v399_v33, 0.0  ;;  %v690_v54 = vmul.f32 0.0, %v624_v20 }
  0x1d   :  { %s628_s26 = sld [smem:[#allocation2 + $0xc]]  ;;  %v634_v25 = vstv %s462_s21  ;;  %v94_v28 = vmul.f32 %v626_v21, %v620_v17  ;;  %v173_v29 = vadd.f32 %v172_v16, %v171_v22  ;;  %v404_v59 = vadd.f32 0.5, %v403_v52 }
  0x1e   :  { %s636_s27 = sld [smem:[#allocation2 + $0xd]]  ;;  %v76_v26 = vmul.f32 %v634_v25, %v630_v23  ;;  %v640_v27 = vstv %s463_s22  ;;  %v696_v56 = vmul.f32 0.0, %v634_v25  ;;  %431 = vst [vmem:[#allocation7 + $0x28] sm:$0xff] %v400_v47 }
  0x1f   :  { %s644_s28 = sld [smem:[#allocation2 + $0xe]]  ;;  %v86_v31 = vmul.f32 %v640_v27, %v630_v23  ;;  %v650_v32 = vstv %s464_s1  ;;  %503 = vrsqrt.f32 %v173_v29  ;;  %v693_v55 = vmul.f32 0.0, %v640_v27 }
  0x20   :  { %s652_s29 = sld [smem:[#allocation2 + $0x10]]  ;;  %v657_v35 = vstv %s612_s23  ;;  %v96_v36 = vmul.f32 %v650_v32, %v630_v23  ;;  %v77_v40 = vadd.f32 %v76_v26, %v74_v24  ;;  %v405_v10 = vmax.f32 %v404_v59, 0.0 }
  0x21   :  { %s663_s30 = sld [smem:[#allocation2 + $0x13]]  ;;  %v666_v38 = vstv %s618_s24  ;;  %v79_v41 = vmul.f32 %v657_v35, %v654_v34  ;;  %v87_v44 = vadd.f32 %v86_v31, %v84_v30  ;;  %v716_v16 = vmul.f32 0.0, %v657_v35 }
  0x22   :  { %s668_s3 = sld [smem:[#allocation2 + $0x14]]  ;;  %v97_v42 = vadd.f32 %v96_v36, %v94_v28  ;;  %v673_v43 = vstv %s622_s25  ;;  %v89_v45 = vmul.f32 %v666_v38, %v654_v34  ;;  %v713_v15 = vmul.f32 0.0, %v666_v38  ;;  %433 = vst [vmem:[#allocation7 + $0x30] sm:$0xff] %v405_v10 }
  0x23   :  { %s675_s4 = sld [smem:[#allocation2 + $0x17]]  ;;  %v99_v46 = vmul.f32 %v673_v43, %v654_v34  ;;  %v80_v57 = vadd.f32 %v79_v41, %v77_v40  ;;  %v81_v61 = vstv %s628_s26  ;;  %v409_v24 = vadd.f32 0.5, %v408_v60  ;;  %s573_s26 = smov [#allocation7]  }
  0x24   :  { %s687_s5 = sld [smem:[#allocation2 + $0x1b]]  ;;  %v90_v62 = vadd.f32 %v89_v45, %v87_v44  ;;  %v91_v63 = vstv %s636_s27  ;;  %v498_v2 = vpop.eup %497  ;;  %v413_v26 = vsub.f32 0.0, %v412_v1  ;;  %s447_s27 = sshll.u32 %s573_s26, 4  ;;  %s448_s27 = int_to_ptr.vmem [resolvable:$true] %s447_s27 }
  0x25   :  { %v100_v53 = vadd.f32 %v99_v46, %v97_v42  ;;  %s698_s6 = sld [smem:[#allocation2 + $0x18]]  ;;  %v101_v58 = vstv %s644_s28  ;;  %v500_v11 = vpop.eup %499  ;;  %v718_v19 = vadd.f32 %v81_v61, %v80_v57  ;;  %v727_v39 = vmul.f32 %v498_v2, %v498_v2  ;;  %s543_s28 = scalar_lea.vmem %s448_s27, 1280 }
  0x26   :  { %s701_s7 = sld [smem:[#allocation2 + $0x1f]]  ;;  %v103_v3 = vstv %s652_s29  ;;  %v502_v18 = vpop.eup %501  ;;  %v721_v28 = vadd.f32 %v91_v63, %v90_v62  ;;  %v410_v40 = vmax.f32 %v409_v24, 0.0  ;;  %v730_v44 = vmul.f32 %v500_v11, %v500_v11  ;;  %p544_p5 = scmp.ne.s32.totalorder %s448_s27, %s543_s28 }
  0x27   :  { %v123_v0 = vstv %s663_s30  ;;  %v709_v12 = vadd.f32 %v101_v58, %v100_v53  ;;  %v104_v29 = vmul.f32 %v103_v3, %v620_v17  ;;  %v732_v45 = vmul.f32 %v502_v18, %v502_v18  ;;  %s742_s8 = sld [smem:[#allocation2 + $0x1c]]  ;;  %p548_p6 = scmp.lt.s32.totalorder %s448_s27, %s448_s27 }
  0x28   :  { %v105_v4 = vstv %s668_s3  ;;  %v124_v9 = vmul.f32 %v123_v0, %v620_v17  ;;  %435 = vst [vmem:[#allocation7 + $0x38] sm:$0xff] %v410_v40  ;;  %v740_v59 = vmul.f32 1.442695, %v413_v26  ;;  %s745_s9 = sld [smem:[#allocation2 + $0x25]]  ;;  %p549_p7 = scmp.lt.s32.totalorder %s543_s28, %s543_s28 }
  0x29   :  { %v125_v13 = vstv %s675_s4  ;;  %v106_v30 = vmul.f32 %v105_v4, %v630_v23  ;;  %505 = vrcp.f32 %v709_v12  ;;  %s747_s10 = sld [smem:[#allocation2 + $0x26]]  ;;  %vm380_vm0 = vcmp.gt.f32.partialorder %v709_v12, 0.2 }
  0x2a   :  { %v126_v22 = vmul.f32 %v125_v13, %v630_v23  ;;  %v128_v31 = vstv %s687_s5  ;;  %s750_s11 = sld [smem:[#allocation2 + $0x23]]  ;;  %p550_p8 = por %p549_p7, %p548_p6 }
  0x2b   :  { %v129_v36 = vmul.f32 %v128_v31, %v654_v34  ;;  %v107_v53 = vadd.f32 %v106_v30, %v104_v29  ;;  %v108_v57 = vstv %s698_s6  ;;  %s754_s12 = sld [smem:[#allocation2 + $0x24]] }
  0x2c   :  { %v127_v33 = vadd.f32 %v126_v22, %v124_v9  ;;  %v504_v41 = vpop.eup %503  ;;  %v131_v42 = vstv %s701_s7  ;;  %s800_s20 = sld [smem:[#allocation2 + $0x11]]  ;;  %p551_p9 = pnand %p550_p8, %p544_p5 }
  0x2d   :  { %v175_v47 = vmul.f32 %v504_v41, %v598_v5  ;;  %v176_v48 = vmul.f32 %v504_v41, %v600_v6  ;;  %v177_v52 = vmul.f32 %v504_v41, %v602_v7  ;;  %v178_v58 = vmul.f32 %v504_v41, %v604_v8  ;;  %s805_s21 = sld [smem:[#allocation2 + $0x15]] }
  0x2e   :  { %v130_v46 = vadd.f32 %v129_v36, %v127_v33  ;;  %v109_v6 = vmul.f32 %v108_v57, %v654_v34  ;;  %s260_s13 = smul.f32 1.3, %s745_s9  ;;  %s809_s22 = sld [smem:[#allocation2 + $0x19]] }
  0x2f   :  { %v179_v61 = vmul.f32 %v177_v52, %v177_v52  ;;  %v184_v62 = vmul.f32 %v177_v52, %v176_v48  ;;  %v189_v63 = vmul.f32 %v177_v52, %v175_v47  ;;  %v180_v0 = vmul.f32 %v178_v58, %v178_v58  ;;  %s261_s14 = smul.f32 1.3, %s747_s10  ;;  %s814_s1 = sld [smem:[#allocation2 + $0x1d]] }
  0x30   :  { %v132_v60 = vadd.f32 %v131_v42, %v130_v46  ;;  %v185_v1 = vmul.f32 %v178_v58, %v175_v47  ;;  %v188_v5 = vmul.f32 %v178_v58, %v176_v48  ;;  %v194_v2 = vmul.f32 %v176_v48, %v176_v48  ;;  %s264_s17 = ssub.f32 0.0, %s260_s13 }
  0x31   :  { %v198_v3 = vmul.f32 %v178_v58, %v177_v52  ;;  %v199_v4 = vmul.f32 %v176_v48, %v175_v47  ;;  %v181_v9 = vadd.f32 %v180_v0, %v179_v61  ;;  %v110_v48 = vadd.f32 %v109_v6, %v107_v53  ;;  %s271_s18 = ssub.f32 0.0, %s261_s14 }
  0x32   :  { %v133_v7 = vadd.f32 1e-07, %v132_v60  ;;  %v186_v10 = vsub.f32 %v184_v62, %v185_v1  ;;  %v190_v8 = vadd.f32 %v189_v63, %v188_v5  ;;  %v192_v11 = vadd.f32 %v185_v1, %v184_v62  ;;  %s280_s0 = ssub.f32 0.0, %s750_s11 }
  0x33   :  { %v195_v13 = vadd.f32 %v194_v2, %v180_v0  ;;  %v200_v18 = vsub.f32 %v198_v3, %v199_v4  ;;  %v202_v22 = vsub.f32 %v188_v5, %v189_v63  ;;  %v182_v24 = vmul.f32 2.0, %v181_v9  ;;  %s286_s19 = ssub.f32 0.0, %s754_s12 }
  0x34   :  { %507 = vrcp.f32 %v133_v7  ;;  %v187_v26 = vmul.f32 2.0, %v186_v10  ;;  %v191_v29 = vmul.f32 2.0, %v190_v8  ;;  %v193_v30 = vmul.f32 2.0, %v192_v11  ;;  %s853_s23 = sld [smem:[#allocation2 + $0x27]] }
  0x35   :  { %v196_v31 = vmul.f32 2.0, %v195_v13  ;;  %v201_v33 = vmul.f32 2.0, %v200_v18  ;;  %v203_v36 = vmul.f32 2.0, %v202_v22  ;;  %v204_v40 = vadd.f32 %v199_v4, %v198_v3  ;;  %s861_s24 = sld [smem:[#allocation2 + $0x28]] }
  0x36   :  { %v183_v41 = vsub.f32 1.0, %v182_v24  ;;  %v206_v42 = vadd.f32 %v194_v2, %v179_v61  ;;  %v214_v46 = vmul.f32 %v187_v26, %v187_v26  ;;  %v217_v47 = vmul.f32 %v191_v29, %v191_v29  ;;  %v752_v1 = vpop.eup %505  ;;  %s489_s25 = sld [smem:[#allocation2 + $0x29]] }
  0x37   :  { %v111_v52 = vstv %s742_s8  ;;  %v197_v57 = vsub.f32 1.0, %v196_v31  ;;  %v205_v58 = vmul.f32 2.0, %v204_v40  ;;  %v225_v63 = vmul.f32 %v201_v33, %v191_v29 }
  0x38   :  { %v207_v60 = vmul.f32 2.0, %v206_v42  ;;  %v212_v62 = vmul.f32 %v183_v41, %v183_v41  ;;  %v236_v0 = vmul.f32 %v193_v30, %v193_v30  ;;  %v215_v5 = vmul.f32 %v214_v46, %v730_v44 }
  0x39   :  { %v220_v61 = vmul.f32 %v193_v30, %v183_v41  ;;  %v222_v2 = vmul.f32 %v197_v57, %v187_v26  ;;  %v228_v7 = vmul.f32 %v203_v36, %v183_v41  ;;  %v218_v3 = vmul.f32 %v217_v47, %v732_v45 }
  0x3a   :  { %v208_v53 = vsub.f32 1.0, %v207_v60  ;;  %v213_v6 = vmul.f32 %v212_v62, %v727_v39  ;;  %v230_v4 = vmul.f32 %v205_v58, %v187_v26  ;;  %v238_v11 = vmul.f32 %v197_v57, %v197_v57 }
  0x3b   :  { %v221_v9 = vmul.f32 %v220_v61, %v727_v39  ;;  %v223_v10 = vmul.f32 %v222_v2, %v730_v44  ;;  %v229_v8 = vmul.f32 %v228_v7, %v727_v39  ;;  %v237_v22 = vmul.f32 %v236_v0, %v727_v39 }
  0x3c   :  { %v231_v13 = vmul.f32 %v230_v4, %v730_v44  ;;  %v233_v18 = vmul.f32 %v208_v53, %v191_v29  ;;  %v241_v24 = vmul.f32 %v201_v33, %v201_v33  ;;  %v216_v31 = vadd.f32 %v215_v5, %v213_v6 }
  0x3d   :  { %v239_v26 = vmul.f32 %v238_v11, %v730_v44  ;;  %v244_v40 = vmul.f32 %v203_v36, %v193_v30  ;;  %v246_v41 = vmul.f32 %v205_v58, %v197_v57  ;;  %v224_v42 = vadd.f32 %v223_v10, %v221_v9 }
  0x3e   :  { %v226_v46 = vmul.f32 %v225_v63, %v732_v45  ;;  %v232_v47 = vadd.f32 %v231_v13, %v229_v8  ;;  %v234_v60 = vmul.f32 %v233_v18, %v732_v45  ;;  %v112_v62 = vadd.f32 %v111_v52, %v110_v48 }
  0x3f   :  { %v278_v29 = vstv %s750_s11  ;;  %v284_v61 = vstv %s754_s12  ;;  %509 = vpow2.f32 %v740_v59  ;;  %v240_v30 = vadd.f32 %v239_v26, %v237_v22 }
  0x40   :  { %v242_v57 = vmul.f32 %v241_v24, %v732_v45  ;;  %v252_v5 = vmul.f32 %v203_v36, %v203_v36  ;;  %v254_v63 = vmul.f32 %v205_v58, %v205_v58  ;;  %v777_v2 = vadd.f32 %v218_v3, %v216_v31 }
  0x41   :  { %v774_v0 = vpop.eup %507  ;;  %v245_v48 = vmul.f32 %v244_v40, %v727_v39  ;;  %v247_v52 = vmul.f32 %v246_v41, %v730_v44  ;;  %v249_v7 = vmul.f32 %v208_v53, %v201_v33  ;;  %v783_v6 = vadd.f32 %v226_v46, %v224_v42 }
  0x42   :  { %v785_v59 = vadd.f32 %v234_v60, %v232_v47  ;;  %v257_v4 = vmul.f32 %v208_v53, %v208_v53  ;;  %v263_v36 = vmul.f32 %v752_v1, %v718_v19  ;;  %v253_v58 = vmul.f32 %v252_v5, %v727_v39 }
  0x43   :  { %v255_v3 = vmul.f32 %v254_v63, %v730_v44  ;;  %v265_v9 = vstv %s264_s17  ;;  %v267_v10 = vstv %s260_s13  ;;  %v135_v33 = vmul.f32 %v774_v0, %v112_v62 }
  0x44   :  { %v796_v8 = vadd.f32 %v242_v57, %v240_v30  ;;  %v266_v11 = vmax.f32 %v265_v9, %v263_v36  ;;  %v270_v53 = vmul.f32 %v752_v1, %v721_v28  ;;  %v248_v19 = vadd.f32 %v247_v52, %v245_v48 }
  0x45   :  { %v250_v13 = vmul.f32 %v249_v7, %v732_v45  ;;  %v272_v39 = vstv %s271_s18  ;;  %v274_v44 = vstv %s261_s14  ;;  %v258_v18 = vmul.f32 %v257_v4, %v732_v45 }
  0x46   :  { %v268_v22 = vmin.f32 %v267_v10, %v266_v11  ;;  %v273_v24 = vmax.f32 %v272_v39, %v270_v53  ;;  %v279_v31 = vmul.f32 %v752_v1, %v278_v29  ;;  %v256_v26 = vadd.f32 %v255_v3, %v253_v58 }
  0x47   :  { %v277_v28 = vmul.f32 %v752_v1, %v752_v1  ;;  %v281_v40 = vstv %s280_s0  ;;  %v285_v41 = vmul.f32 %v752_v1, %v284_v61  ;;  %v287_v60 = vstv %s286_s19 }
  0x48   :  { %v269_v42 = vmul.f32 %v268_v22, %v709_v12  ;;  %v275_v46 = vmin.f32 %v274_v44, %v273_v24  ;;  %v290_v45 = vmul.f32 %v279_v31, %v614_v14  ;;  %v295_v47 = vmul.f32 %v279_v31, %v634_v25 }
  0x49   :  { %v300_v62 = vmul.f32 %v279_v31, %v657_v35  ;;  %v306_v29 = vmul.f32 %v285_v41, %v624_v20  ;;  %v311_v30 = vmul.f32 %v285_v41, %v640_v27  ;;  %v822_v57 = vadd.f32 1.0, %v135_v33 }
  0x4a   :  { %v251_v1 = vadd.f32 %v250_v13, %v248_v19  ;;  %v276_v61 = vmul.f32 %v275_v46, %v709_v12  ;;  %v282_v5 = vmul.f32 %v281_v40, %v269_v42  ;;  %v259_v63 = vadd.f32 %v258_v18, %v256_v26 }
  0x4b   :  { %v292_v14 = vadd.f32 %v690_v54, %v290_v45  ;;  %v297_v25 = vadd.f32 %v693_v55, %v295_v47  ;;  %v316_v48 = vmul.f32 %v285_v41, %v666_v38  ;;  %v302_v52 = vadd.f32 %v713_v15, %v300_v62 }
  0x4c   :  { %v828_v35 = vpop.eup %509  ;;  %v283_v20 = vmul.f32 %v282_v5, %v277_v28  ;;  %v288_v27 = vmul.f32 %v287_v60, %v276_v61  ;;  %v113_v7 = vstv %s800_s20  ;;  %v307_v4 = vadd.f32 %v306_v29, %v682_v49 }
  0x4d   :  { %v312_v36 = vadd.f32 %v311_v30, %v696_v56  ;;  %v114_v58 = vmul.f32 %v113_v7, %v620_v17  ;;  %v115_v54 = vstv %s805_s21  ;;  %v317_v10 = vadd.f32 %v316_v48, %v716_v16 }
  0x4e   :  { %v289_v3 = vmul.f32 %v288_v27, %v277_v28  ;;  %v293_v55 = vmul.f32 %v283_v20, %v626_v21  ;;  %v298_v38 = vmul.f32 %v283_v20, %v650_v32  ;;  %v303_v9 = vmul.f32 %v283_v20, %v673_v43 }
  0x4f   :  { %v116_v33 = vmul.f32 %v115_v54, %v630_v23  ;;  %v118_v15 = vstv %s809_s22  ;;  %v121_v11 = vstv %s814_s1 }
  0x50   :  { %v294_v53 = vadd.f32 %v293_v55, %v292_v14  ;;  %v299_v49 = vadd.f32 %v298_v38, %v297_v25  ;;  %v304_v19 = vadd.f32 %v303_v9, %v302_v52  ;;  %v308_v56 = vmul.f32 %v289_v3, %v626_v21 }
  0x51   :  { %v313_v17 = vmul.f32 %v289_v3, %v650_v32  ;;  %v318_v13 = vmul.f32 %v289_v3, %v673_v43  ;;  %v117_v39 = vadd.f32 %v116_v33, %v114_v58  ;;  %v119_v44 = vmul.f32 %v118_v15, %v654_v34 }
  0x52   :  { %v309_v18 = vadd.f32 %v308_v56, %v307_v4  ;;  %v320_v22 = vmul.f32 %v294_v53, %v777_v2  ;;  %v321_v16 = vmul.f32 %v299_v49, %v783_v6  ;;  %v323_v23 = vmul.f32 %v304_v19, %v785_v59 }
  0x53   :  { %v314_v24 = vadd.f32 %v313_v17, %v312_v36  ;;  %v319_v31 = vadd.f32 %v318_v13, %v317_v10  ;;  %v325_v26 = vmul.f32 %v294_v53, %v783_v6  ;;  %v326_v21 = vmul.f32 %v299_v49, %v796_v8 }
  0x54   :  { %v322_v28 = vadd.f32 %v321_v16, %v320_v22  ;;  %v328_v32 = vmul.f32 %v304_v19, %v251_v1  ;;  %v330_v43 = vmul.f32 %v294_v53, %v785_v59  ;;  %v331_v40 = vmul.f32 %v299_v49, %v251_v1 }
  0x55   :  { %v327_v34 = vadd.f32 %v326_v21, %v325_v26  ;;  %v333_v41 = vmul.f32 %v304_v19, %v259_v63  ;;  %v335_v42 = vmul.f32 %v309_v18, %v777_v2  ;;  %v336_v46 = vmul.f32 %v314_v24, %v783_v6 }
  0x56   :  { %v324_v45 = vadd.f32 %v323_v23, %v322_v28  ;;  %v332_v47 = vadd.f32 %v331_v40, %v330_v43  ;;  %v338_v60 = vmul.f32 %v319_v31, %v785_v59  ;;  %v340_v62 = vmul.f32 %v309_v18, %v783_v6 }
  0x57   :  { %v329_v29 = vadd.f32 %v328_v32, %v327_v34  ;;  %v337_v30 = vadd.f32 %v336_v46, %v335_v42  ;;  %v341_v61 = vmul.f32 %v314_v24, %v796_v8  ;;  %v343_v5 = vmul.f32 %v319_v31, %v251_v1 }
  0x58   :  { %v334_v14 = vadd.f32 %v333_v41, %v332_v47  ;;  %v345_v25 = vmul.f32 %v309_v18, %v785_v59  ;;  %v346_v48 = vmul.f32 %v314_v24, %v251_v1  ;;  %v348_v20 = vmul.f32 %v319_v31, %v259_v63 }
  0x59   :  { %v339_v27 = vadd.f32 %v338_v60, %v337_v30  ;;  %v342_v2 = vadd.f32 %v341_v61, %v340_v62  ;;  %v350_v52 = vmul.f32 %v324_v45, %v294_v53  ;;  %v351_v7 = vmul.f32 %v329_v29, %v299_v49 }
  0x5a   :  { %v347_v4 = vadd.f32 %v346_v48, %v345_v25  ;;  %v353_v36 = vmul.f32 %v334_v14, %v304_v19  ;;  %v356_v6 = vmul.f32 %v324_v45, %v309_v18  ;;  %v357_v58 = vmul.f32 %v329_v29, %v314_v24 }
  0x5b   :  { %v344_v54 = vadd.f32 %v343_v5, %v342_v2  ;;  %v352_v3 = vadd.f32 %v351_v7, %v350_v52  ;;  %v359_v8 = vmul.f32 %v334_v14, %v319_v31  ;;  %v361_v55 = vmul.f32 %v339_v27, %v309_v18 }
  0x5c   :  { %v349_v38 = vadd.f32 %v348_v20, %v347_v4  ;;  %v358_v9 = vadd.f32 %v357_v58, %v356_v6  ;;  %v120_v59 = vadd.f32 %v119_v44, %v117_v39  ;;  %v416_v1 = vadd.f32 1.0, %v828_v35 }
  0x5d   :  { %v137_v63 = vstv %s853_s23  ;;  %v354_v10 = vadd.f32 %v353_v36, %v352_v3  ;;  %v362_v33 = vmul.f32 %v344_v54, %v314_v24  ;;  %v378_v17 = vadd.s32 %v685_v51, %v373_v50 }
  0x5e   :  { %v364_v15 = vmul.f32 %v349_v38, %v319_v31  ;;  %v122_v53 = vadd.f32 %v121_v11, %v120_v59  ;;  %511 = vrcp.f32 %v416_v1  ;;  %v360_v49 = vadd.f32 %v359_v8, %v358_v9 }
  0x5f   :  { %v363_v19 = vadd.f32 %v362_v33, %v361_v55  ;;  %v138_v56 = vmul.f32 %v137_v63, %v822_v57  ;;  %v355_v39 = vadd.f32 0.3, %v354_v10  ;;  %v143_v35 = vstv %s861_s24 }
  0x60   :  { %v141_v13 = vmul.f32 %v774_v0, %v122_v53  ;;  %v368_v16 = vmul.f32 %v360_v49, %v360_v49  ;;  %v379_v24 = vcvt.s32.f32 %v378_v17  ;;  %v383_v26 = vstv %s489_s25 }
  0x61   :  { %v365_v44 = vadd.f32 %v364_v15, %v363_v19  ;;  %v490_v23 = vadd.f32 -1.0, %v138_v56 }
  0x62   :  { %v142_v18 = vadd.f32 1.0, %v141_v13  ;;  %vm384_vm1 = vcmp.lt.f32.partialorder %v379_v24, %v383_v26 }
  0x63   :  { %v366_v22 = vadd.f32 0.3, %v365_v44  ;;  %v140_v37 = vmul.f32 0.5, %v490_v23 }
  0x64   :  { %v144_v11 = vmul.f32 %v143_v35, %v142_v18 }
  0x65   :  { %v367_v31 = vmul.f32 %v366_v22, %v355_v39 }
  0x66   :  { %v491_v21 = vadd.f32 -1.0, %v144_v11 }
  0x67   :  { %v369_v28 = vsub.f32 %v367_v31, %v368_v16 }
  0x68   :  { %v146_v50 = vmul.f32 0.5, %v491_v21 }
  0x69   :  { %vm381_vm2 = vcmp.gt.f32.partialorder %v369_v28, 0.0 }
  0x6a   :  { %vm382_vm3 = vmand %vm380_vm0, %vm381_vm2  ;;  %v386_v51 = vsel %vm381_vm2, %v369_v28, 1.0 }
  0x6b   :  { %v512_v0 = vpop.eup %511  ;;  %vm872_vm4 = vmand %vm382_vm3, %vm384_vm1  ;;  %513 = vrcp.f32 %v386_v51 }
  0x6c   :  { %v419_v32 = vsel %vm872_vm4, %v140_v37, 0.0  ;;  %v421_v43 = vsel %vm872_vm4, %v146_v50, 0.0  ;;  %v436_v40 = vsel %vm872_vm4, %v512_v0, 0.0  ;;  %v439_v34 = vsel %vm872_vm4, %v709_v12, 1e+10 }
  0x6d   :  { %420 = vst [vmem:[#allocation7] sm:$0xff] %v419_v32  ;;  %423 = vst [vmem:[#allocation7 + $0x8] sm:$0xff] %v421_v43 }
  0x6e   :  { %438 = vst [vmem:[#allocation7 + $0x40] sm:$0xff] %v436_v40  ;;  %441 = vst [vmem:[#allocation7 + $0x48] sm:$0xff] %v439_v34 }
  0x78   :  { %v514_v41 = vpop.eup %513 }
  0x79   :  { %v388_v42 = vmul.f32 %v514_v41, %v366_v22  ;;  %v391_v46 = vmul.f32 %v514_v41, %v360_v49  ;;  %v393_v45 = vmul.f32 %v514_v41, %v355_v39 }
  0x7b   :  { %v389_v47 = vmul.f32 -0.5, %v388_v42  ;;  %v392_v60 = vsel %vm872_vm4, %v391_v46, 0.0  ;;  %v394_v62 = vmul.f32 -0.5, %v393_v45 }
  0x7c   :  { %427 = vst [vmem:[#allocation7 + $0x18] sm:$0xff] %v392_v60 }
  0x7d   :  { %v390_v12 = vsel %vm872_vm4, %v389_v47, 0.0  ;;  %v395_v29 = vsel %vm872_vm4, %v394_v62, 0.0 }
  0x7e   :  { %425 = vst [vmem:[#allocation7 + $0x10] sm:$0xff] %v390_v12  ;;  %429 = vst [vmem:[#allocation7 + $0x20] sm:$0xff] %v395_v29 }
  0x7f   :  { %554 = shalt.err (!%p551_p9)
}
  0x80   :  { %453 = dma.vmem_to_hbm [thread:$0]  %s448_s27, 1280, %s899_s2, [#allocation4], %s571_s15, %s571_s15, %s572_s16  }
  0x81   :  { %567 = dma.done.wait [#allocation4], 1280  }
  0x82   :  { %568 = vsyncadd [#allocation4], 4294966016 }
  0x83   :  { %457 = vsyncpa [#allocation3], 1 }
  0x84   :  { %458 = vsyncpa [#allocation4], 1 }
  0x85   :  { %459 = vsyncpa [#allocation5], 1 }

</bundles_post_ra>
